<compile_context>
chip_gen: v6e
topology: v6e:2x2x1
jax: 0.10.0
libtpu: 0.0.40
codegen_flags: <defaults>
</compile_context>

<pallas_src>
import functools

import jax
import jax.numpy as jnp
from jax.experimental import pallas as pl
from jax.experimental.pallas import tpu as pltpu

LANE = 128  # output-channel lane padding (keeps kernel stores lane-dense)


def _round_up(x, m):
    return (x + m - 1) // m * m


# ----------------------------------------------------------------------------
# Pallas kernel: fused bf16 GEMM + per-channel affine (folded BN) + activation
# ----------------------------------------------------------------------------
def _fused_matmul_kernel(a_ref, b_ref, scale_ref, shift_ref, o_ref, *, act):
    acc = jnp.dot(a_ref[...], b_ref[...], preferred_element_type=jnp.float32)
    y = acc * scale_ref[...] + shift_ref[...]          # f32 epilogue
    if act == "lrelu":
        y = jnp.maximum(y, 0.05 * y)                   # F.leaky_relu(x, 0.05)
    elif act == "tanh":
        y = jnp.tanh(y)                                # F.tanh
    o_ref[...] = y.astype(o_ref.dtype)                 # single store


def fused_matmul(a, b, scale, shift, act, out_dtype, tm=64):
    """out = act((a @ b) * scale + shift).

    a: (M, K) bf16 patches (K compact, full-dim block),
    b: (K, N) bf16 weights (resident block), scale/shift: (1, N) f32.
    Grid tiles M only ("parallel"); ragged tail handled by Pallas masking.
    """
    M, K = a.shape
    _, N = b.shape
    tm = min(tm, _round_up(M, 8))

    kernel = functools.partial(_fused_matmul_kernel, act=act)
    return pl.pallas_call(
        kernel,
        out_shape=jax.ShapeDtypeStruct((M, N), out_dtype),
        grid=(pl.cdiv(M, tm),),
        in_specs=[
            pl.BlockSpec((tm, K), lambda i: (i, 0)),
            pl.BlockSpec((K, N), lambda i: (0, 0)),
            pl.BlockSpec((1, N), lambda i: (0, 0)),
            pl.BlockSpec((1, N), lambda i: (0, 0)),
        ],
        out_specs=pl.BlockSpec((tm, N), lambda i: (i, 0)),
        compiler_params=pltpu.CompilerParams(
            dimension_semantics=("parallel",)),
    )(a, b, scale, shift)


# ----------------------------------------------------------------------------
# Plain-JAX glue (runs inside the jitted forward, fused by XLA): im2col
# TODO(synk): fold patch extraction into the Pallas kernel (in-VMEM gather).
# ----------------------------------------------------------------------------
def _im2col(x, kh, kw, stride, pad):
    """x: (N, H, W, C) -> (N, OH, OW, kh*kw*C), patch order (kh, kw, C)."""
    x = jnp.pad(x, ((0, 0), (pad, pad), (pad, pad), (0, 0)))
    n, h, w, c = x.shape
    oh = (h - kh) // stride + 1
    ow = (w - kw) // stride + 1
    patches = []
    for i in range(kh):
        for j in range(kw):
            patches.append(x[:, i:i + oh * stride:stride,
                               j:j + ow * stride:stride, :])
    p = jnp.stack(patches, axis=-2)                    # (N, OH, OW, kh*kw, C)
    return p.reshape(n, oh, ow, kh * kw * c), oh, ow


def conv_layer(x, w_mat, scale, shift, k, stride, pad, act,
               out_dtype=jnp.bfloat16):
    cin = w_mat.shape[0] // (k * k)
    x = x[..., :cin]            # drop previous layer's lane padding (compact K)
    patches, oh, ow = _im2col(x, k, k, stride, pad)
    n = x.shape[0]
    kdim = patches.shape[-1]
    out = fused_matmul(patches.reshape(n * oh * ow, kdim),
                       w_mat, scale, shift, act, out_dtype)
    return out.reshape(n, oh, ow, w_mat.shape[1])


def deconv_layer(x, w_mat, scale, shift, act, out_dtype=jnp.bfloat16):
    # ConvTranspose2d(k=4, stride=2, pad=1) via sub-pixel decomposition:
    # one stride-1 GEMM over 3x3 patches of the pad-1 input producing all 4
    # output phases (N = 4*Cp), then a depth-to-space interleave.
    cin = w_mat.shape[0] // 9
    x = x[..., :cin]
    n, h, w, _ = x.shape
    patches, oh, ow = _im2col(x, 3, 3, 1, 1)           # oh=h, ow=w
    kdim = patches.shape[-1]
    out = fused_matmul(patches.reshape(n * oh * ow, kdim),
                       w_mat, scale, shift, act, out_dtype)
    cp = w_mat.shape[1] // 4
    out = out.reshape(n, h, w, 2, 2, cp)               # (n, h, w, py, px, C)
    out = jnp.transpose(out, (0, 1, 3, 2, 4, 5)).reshape(n, 2 * h, 2 * w, cp)
    return out


# ----------------------------------------------------------------------------
# Deterministic parameter construction (compact cin, padded cout, bf16 weights)
# ----------------------------------------------------------------------------
def _bn_scale_shift(key, cout, bn):
    if not bn:
        return jnp.ones((cout,), jnp.float32), jnp.zeros((cout,), jnp.float32)
    k1, k2, k3, k4 = jax.random.split(key, 4)
    gamma = 1.0 + 0.1 * jax.random.normal(k1, (cout,), jnp.float32)
    beta = 0.1 * jax.random.normal(k2, (cout,), jnp.float32)
    mean = 0.1 * jax.random.normal(k3, (cout,), jnp.float32)
    var = 1.0 + 0.1 * jnp.abs(jax.random.normal(k4, (cout,), jnp.float32))
    scale = gamma / jnp.sqrt(var + 1e-5)
    shift = beta - mean * scale
    return scale, shift


def make_conv_params(key, cin, cout, k, bn=True):
    kw_, kb = jax.random.split(key)
    coutp = _round_up(cout, LANE)
    # PyTorch Conv2d weight: (C_out, C_in, KH, KW), bias=False
    w = 0.05 * jax.random.normal(kw_, (cout, cin, k, k), jnp.float32)
    w_mat = jnp.transpose(w, (2, 3, 1, 0)).reshape(k * k * cin, cout)
    w_pad = jnp.zeros((k * k * cin, coutp), jnp.float32)
    w_pad = w_pad.at[:, :cout].set(w_mat).astype(jnp.bfloat16)
    scale, shift = _bn_scale_shift(kb, cout, bn)
    sc = jnp.zeros((1, coutp), jnp.float32).at[0, :cout].set(scale)
    sh = jnp.zeros((1, coutp), jnp.float32).at[0, :cout].set(shift)
    return w_pad, sc, sh


def make_deconv_params(key, cin, cout, bn=True):
    # PyTorch ConvTranspose2d weight: (C_in, C_out, 4, 4), stride=2, pad=1.
    kw_, kb = jax.random.split(key)
    coutp = _round_up(cout, LANE)
    w = 0.05 * jax.random.normal(kw_, (cin, cout, 4, 4), jnp.float32)
    # Sub-pixel decomposition onto 3x3 patches of the pad-1 input.
    # Output phase py uses (patch_row r -> kernel row ky):
    #   py=0: (0,3),(1,1)    py=1: (1,2),(2,0)     (same mapping for columns)
    row_map = {0: ((0, 3), (1, 1)), 1: ((1, 2), (2, 0))}
    wfull = jnp.zeros((3, 3, cin, 4, coutp), jnp.float32)
    for py in (0, 1):
        for px in (0, 1):
            q = py * 2 + px
            for r, ky in row_map[py]:
                for c, kx in row_map[px]:
                    wfull = wfull.at[r, c, :, q, :cout].set(w[:, :, ky, kx])
    w_mat = wfull.reshape(3 * 3 * cin, 4 * coutp).astype(jnp.bfloat16)
    scale, shift = _bn_scale_shift(kb, cout, bn)
    sc = jnp.zeros((4, coutp), jnp.float32).at[:, :cout].set(scale[None, :])
    sh = jnp.zeros((4, coutp), jnp.float32).at[:, :cout].set(shift[None, :])
    return w_mat, sc.reshape(1, 4 * coutp), sh.reshape(1, 4 * coutp)


def init_generator_params(key, input_dim, output_dim, conv_dim):
    ks = jax.random.split(key, 6)
    return {
        "conv1": make_conv_params(ks[0], input_dim, conv_dim, 4),
        "conv2": make_conv_params(ks[1], conv_dim, conv_dim * 2, 4),
        "conv3": make_conv_params(ks[2], conv_dim * 2, conv_dim * 2, 3),
        "conv4": make_conv_params(ks[3], conv_dim * 2, conv_dim * 2, 3),
        "deconv1": make_deconv_params(ks[4], conv_dim * 2, conv_dim),
        "deconv2": make_deconv_params(ks[5], conv_dim, output_dim, bn=False),
    }


# ----------------------------------------------------------------------------
# Forward pass (matches G.forward)
# ----------------------------------------------------------------------------
@functools.partial(jax.jit, static_argnames=("output_dim",))
def generator_forward(x_nchw, params, *, output_dim):
    # NCHW -> NHWC, compact channels, bf16 once.
    x = jnp.transpose(x_nchw, (0, 2, 3, 1)).astype(jnp.bfloat16)
    x = conv_layer(x, *params["conv1"], k=4, stride=2, pad=1, act="lrelu")
    x = conv_layer(x, *params["conv2"], k=4, stride=2, pad=1, act="lrelu")
    x = conv_layer(x, *params["conv3"], k=3, stride=1, pad=1, act="lrelu")
    x = conv_layer(x, *params["conv4"], k=3, stride=1, pad=1, act="lrelu")
    x = deconv_layer(x, *params["deconv1"], act="lrelu")
    x = deconv_layer(x, *params["deconv2"], act="tanh", out_dtype=jnp.float32)
    x = x[..., :output_dim]                       # drop lane padding once
    return jnp.transpose(x, (0, 3, 1, 2))         # NHWC -> NCHW


if __name__ == "__main__":
    batch, input_dim, output_dim, conv_dim, H = 2, 1, 1, 8, 16

    root = jax.random.PRNGKey(0)
    k_x, k_p = jax.random.split(root)
    x = jax.random.normal(k_x, (batch, input_dim, H, H), jnp.float32)
    params = init_generator_params(k_p, input_dim, output_dim, conv_dim)

    out = generator_forward(x, params, output_dim=output_dim)
    out = jax.block_until_ready(out)

    assert out.shape == (batch, output_dim, H, H), out.shape
    assert bool(jnp.all(jnp.isfinite(out)))
    print("KERNEL_OK")
</pallas_src>

<mosaic_0001>
module attributes {stable_mosaic.version = 11 : i64} {
  func.func @_fused_matmul_kernel(%arg0: i32, %arg1: memref<64x16xbf16, #tpu.memory_space<vmem>>, %arg2: memref<16x128xbf16, #tpu.memory_space<vmem>>, %arg3: memref<1x128xf32, #tpu.memory_space<vmem>>, %arg4: memref<1x128xf32, #tpu.memory_space<vmem>>, %arg5: memref<64x128xbf16, #tpu.memory_space<vmem>>) attributes {dimension_semantics = [#tpu.dimension_semantics<parallel>], iteration_bounds = array<i64: 2>, scalar_prefetch = 0 : i64, scratch_operands = 0 : i64, tpu.core_type = #tpu.core_type<tc>, window_params = [{transform_indices = @transform_0, window_bounds = array<i64: 64, 16>}, {pipeline_mode = #tpu.pipeline_mode<synchronous>, transform_indices = @transform_1, window_bounds = array<i64: 16, 128>}, {pipeline_mode = #tpu.pipeline_mode<synchronous>, transform_indices = @transform_2, window_bounds = array<i64: 1, 128>}, {pipeline_mode = #tpu.pipeline_mode<synchronous>, transform_indices = @transform_3, window_bounds = array<i64: 1, 128>}, {transform_indices = @transform_4, window_bounds = array<i64: 64, 128>}]} {
    %c0 = arith.constant 0 : index
    %c0_0 = arith.constant 0 : index
    %0 = vector.load %arg1[%c0, %c0_0] : memref<64x16xbf16, #tpu.memory_space<vmem>>, vector<64x16xbf16>
    %c0_1 = arith.constant 0 : index
    %c0_2 = arith.constant 0 : index
    %1 = vector.load %arg2[%c0_1, %c0_2] : memref<16x128xbf16, #tpu.memory_space<vmem>>, vector<16x128xbf16>
    %cst = arith.constant dense<0.000000e+00> : vector<64x128xf32>
    %2 = tpu.matmul %0, %1, %cst {dimension_numbers = #tpu.dot_dimension_numbers<[1], [0], [0], [1], [0, 0, 1, 1], [], []>} : vector<64x16xbf16>, vector<16x128xbf16>, vector<64x128xf32> -> vector<64x128xf32>
    %c0_3 = arith.constant 0 : index
    %c0_4 = arith.constant 0 : index
    %3 = vector.load %arg3[%c0_3, %c0_4] : memref<1x128xf32, #tpu.memory_space<vmem>>, vector<1x128xf32>
    %4 = vector.broadcast %3 : vector<1x128xf32> to vector<64x128xf32>
    %5 = arith.mulf %2, %4 : vector<64x128xf32>
    %c0_5 = arith.constant 0 : index
    %c0_6 = arith.constant 0 : index
    %6 = vector.load %arg4[%c0_5, %c0_6] : memref<1x128xf32, #tpu.memory_space<vmem>>, vector<1x128xf32>
    %7 = vector.broadcast %6 : vector<1x128xf32> to vector<64x128xf32>
    %8 = arith.addf %5, %7 : vector<64x128xf32>
    %cst_7 = arith.constant 5.000000e-02 : f32
    %9 = vector.broadcast %cst_7 : f32 to vector<64x128xf32>
    %10 = arith.mulf %9, %8 : vector<64x128xf32>
    %11 = arith.maximumf %8, %10 : vector<64x128xf32>
    %12 = arith.truncf %11 : vector<64x128xf32> to vector<64x128xbf16>
    %c0_8 = arith.constant 0 : index
    %c0_9 = arith.constant 0 : index
    %13 = vector.load %arg5[%c0_8, %c0_9] : memref<64x128xbf16, #tpu.memory_space<vmem>>, vector<64x128xbf16>
    tpu.vector_store %arg5[%c0_8, %c0_9], %12 {strides = array<i32>} : memref<64x128xbf16, #tpu.memory_space<vmem>>, vector<64x128xbf16>,
    return
  }
  func.func @transform_0(%arg0: i32) -> (i32, i32) {
    %c0_i32 = arith.constant 0 : i32
    %c0_i32_0 = arith.constant 0 : i32
    return %arg0, %c0_i32 : i32, i32
  }
  func.func @transform_1(%arg0: i32) -> (i32, i32) {
    %c0_i32 = arith.constant 0 : i32
    %c0_i32_0 = arith.constant 0 : i32
    %c0_i32_1 = arith.constant 0 : i32
    return %c0_i32, %c0_i32_0 : i32, i32
  }
  func.func @transform_2(%arg0: i32) -> (i32, i32) {
    %c0_i32 = arith.constant 0 : i32
    %c0_i32_0 = arith.constant 0 : i32
    %c0_i32_1 = arith.constant 0 : i32
    return %c0_i32, %c0_i32_0 : i32, i32
  }
  func.func @transform_3(%arg0: i32) -> (i32, i32) {
    %c0_i32 = arith.constant 0 : i32
    %c0_i32_0 = arith.constant 0 : i32
    %c0_i32_1 = arith.constant 0 : i32
    return %c0_i32, %c0_i32_0 : i32, i32
  }
  func.func @transform_4(%arg0: i32) -> (i32, i32) {
    %c0_i32 = arith.constant 0 : i32
    %c0_i32_0 = arith.constant 0 : i32
    return %arg0, %c0_i32 : i32, i32
  }
}

module attributes {stable_mosaic.version = 11 : i64} {
  func.func @_fused_matmul_kernel(%arg0: i32, %arg1: memref<32x128xbf16, #tpu.memory_space<vmem>>, %arg2: memref<128x128xbf16, #tpu.memory_space<vmem>>, %arg3: memref<1x128xf32, #tpu.memory_space<vmem>>, %arg4: memref<1x128xf32, #tpu.memory_space<vmem>>, %arg5: memref<32x128xbf16, #tpu.memory_space<vmem>>) attributes {dimension_semantics = [#tpu.dimension_semantics<parallel>], iteration_bounds = array<i64: 1>, scalar_prefetch = 0 : i64, scratch_operands = 0 : i64, tpu.core_type = #tpu.core_type<tc>, window_params = [{transform_indices = @transform_0, window_bounds = array<i64: 32, 128>}, {pipeline_mode = #tpu.pipeline_mode<synchronous>, transform_indices = @transform_1, window_bounds = array<i64: 128, 128>}, {pipeline_mode = #tpu.pipeline_mode<synchronous>, transform_indices = @transform_2, window_bounds = array<i64: 1, 128>}, {pipeline_mode = #tpu.pipeline_mode<synchronous>, transform_indices = @transform_3, window_bounds = array<i64: 1, 128>}, {transform_indices = @transform_4, window_bounds = array<i64: 32, 128>}]} {
    %c0 = arith.constant 0 : index
    %c0_0 = arith.constant 0 : index
    %0 = vector.load %arg1[%c0, %c0_0] : memref<32x128xbf16, #tpu.memory_space<vmem>>, vector<32x128xbf16>
    %c0_1 = arith.constant 0 : index
    %c0_2 = arith.constant 0 : index
    %1 = vector.load %arg2[%c0_1, %c0_2] : memref<128x128xbf16, #tpu.memory_space<vmem>>, vector<128x128xbf16>
    %cst = arith.constant dense<0.000000e+00> : vector<32x128xf32>
    %2 = tpu.matmul %0, %1, %cst {dimension_numbers = #tpu.dot_dimension_numbers<[1], [0], [0], [1], [0, 0, 1, 1], [], []>} : vector<32x128xbf16>, vector<128x128xbf16>, vector<32x128xf32> -> vector<32x128xf32>
    %c0_3 = arith.constant 0 : index
    %c0_4 = arith.constant 0 : index
    %3 = vector.load %arg3[%c0_3, %c0_4] : memref<1x128xf32, #tpu.memory_space<vmem>>, vector<1x128xf32>
    %4 = vector.broadcast %3 : vector<1x128xf32> to vector<32x128xf32>
    %5 = arith.mulf %2, %4 : vector<32x128xf32>
    %c0_5 = arith.constant 0 : index
    %c0_6 = arith.constant 0 : index
    %6 = vector.load %arg4[%c0_5, %c0_6] : memref<1x128xf32, #tpu.memory_space<vmem>>, vector<1x128xf32>
    %7 = vector.broadcast %6 : vector<1x128xf32> to vector<32x128xf32>
    %8 = arith.addf %5, %7 : vector<32x128xf32>
    %cst_7 = arith.constant 5.000000e-02 : f32
    %9 = vector.broadcast %cst_7 : f32 to vector<32x128xf32>
    %10 = arith.mulf %9, %8 : vector<32x128xf32>
    %11 = arith.maximumf %8, %10 : vector<32x128xf32>
    %12 = arith.truncf %11 : vector<32x128xf32> to vector<32x128xbf16>
    %c0_8 = arith.constant 0 : index
    %c0_9 = arith.constant 0 : index
    %13 = vector.load %arg5[%c0_8, %c0_9] : memref<32x128xbf16, #tpu.memory_space<vmem>>, vector<32x128xbf16>
    tpu.vector_store %arg5[%c0_8, %c0_9], %12 {strides = array<i32>} : memref<32x128xbf16, #tpu.memory_space<vmem>>, vector<32x128xbf16>,
    return
  }
  func.func @transform_0(%arg0: i32) -> (i32, i32) {
    %c0_i32 = arith.constant 0 : i32
    %c0_i32_0 = arith.constant 0 : i32
    return %arg0, %c0_i32 : i32, i32
  }
  func.func @transform_1(%arg0: i32) -> (i32, i32) {
    %c0_i32 = arith.constant 0 : i32
    %c0_i32_0 = arith.constant 0 : i32
    %c0_i32_1 = arith.constant 0 : i32
    return %c0_i32, %c0_i32_0 : i32, i32
  }
  func.func @transform_2(%arg0: i32) -> (i32, i32) {
    %c0_i32 = arith.constant 0 : i32
    %c0_i32_0 = arith.constant 0 : i32
    %c0_i32_1 = arith.constant 0 : i32
    return %c0_i32, %c0_i32_0 : i32, i32
  }
  func.func @transform_3(%arg0: i32) -> (i32, i32) {
    %c0_i32 = arith.constant 0 : i32
    %c0_i32_0 = arith.constant 0 : i32
    %c0_i32_1 = arith.constant 0 : i32
    return %c0_i32, %c0_i32_0 : i32, i32
  }
  func.func @transform_4(%arg0: i32) -> (i32, i32) {
    %c0_i32 = arith.constant 0 : i32
    %c0_i32_0 = arith.constant 0 : i32
    return %arg0, %c0_i32 : i32, i32
  }
}

module attributes {stable_mosaic.version = 11 : i64} {
  func.func @_fused_matmul_kernel(%arg0: i32, %arg1: memref<32x144xbf16, #tpu.memory_space<vmem>>, %arg2: memref<144x128xbf16, #tpu.memory_space<vmem>>, %arg3: memref<1x128xf32, #tpu.memory_space<vmem>>, %arg4: memref<1x128xf32, #tpu.memory_space<vmem>>, %arg5: memref<32x128xbf16, #tpu.memory_space<vmem>>) attributes {dimension_semantics = [#tpu.dimension_semantics<parallel>], iteration_bounds = array<i64: 1>, scalar_prefetch = 0 : i64, scratch_operands = 0 : i64, tpu.core_type = #tpu.core_type<tc>, window_params = [{transform_indices = @transform_0, window_bounds = array<i64: 32, 144>}, {pipeline_mode = #tpu.pipeline_mode<synchronous>, transform_indices = @transform_1, window_bounds = array<i64: 144, 128>}, {pipeline_mode = #tpu.pipeline_mode<synchronous>, transform_indices = @transform_2, window_bounds = array<i64: 1, 128>}, {pipeline_mode = #tpu.pipeline_mode<synchronous>, transform_indices = @transform_3, window_bounds = array<i64: 1, 128>}, {transform_indices = @transform_4, window_bounds = array<i64: 32, 128>}]} {
    %c0 = arith.constant 0 : index
    %c0_0 = arith.constant 0 : index
    %0 = vector.load %arg1[%c0, %c0_0] : memref<32x144xbf16, #tpu.memory_space<vmem>>, vector<32x144xbf16>
    %c0_1 = arith.constant 0 : index
    %c0_2 = arith.constant 0 : index
    %1 = vector.load %arg2[%c0_1, %c0_2] : memref<144x128xbf16, #tpu.memory_space<vmem>>, vector<144x128xbf16>
    %cst = arith.constant dense<0.000000e+00> : vector<32x128xf32>
    %2 = tpu.matmul %0, %1, %cst {dimension_numbers = #tpu.dot_dimension_numbers<[1], [0], [0], [1], [0, 0, 1, 1], [], []>} : vector<32x144xbf16>, vector<144x128xbf16>, vector<32x128xf32> -> vector<32x128xf32>
    %c0_3 = arith.constant 0 : index
    %c0_4 = arith.constant 0 : index
    %3 = vector.load %arg3[%c0_3, %c0_4] : memref<1x128xf32, #tpu.memory_space<vmem>>, vector<1x128xf32>
    %4 = vector.broadcast %3 : vector<1x128xf32> to vector<32x128xf32>
    %5 = arith.mulf %2, %4 : vector<32x128xf32>
    %c0_5 = arith.constant 0 : index
    %c0_6 = arith.constant 0 : index
    %6 = vector.load %arg4[%c0_5, %c0_6] : memref<1x128xf32, #tpu.memory_space<vmem>>, vector<1x128xf32>
    %7 = vector.broadcast %6 : vector<1x128xf32> to vector<32x128xf32>
    %8 = arith.addf %5, %7 : vector<32x128xf32>
    %cst_7 = arith.constant 5.000000e-02 : f32
    %9 = vector.broadcast %cst_7 : f32 to vector<32x128xf32>
    %10 = arith.mulf %9, %8 : vector<32x128xf32>
    %11 = arith.maximumf %8, %10 : vector<32x128xf32>
    %12 = arith.truncf %11 : vector<32x128xf32> to vector<32x128xbf16>
    %c0_8 = arith.constant 0 : index
    %c0_9 = arith.constant 0 : index
    %13 = vector.load %arg5[%c0_8, %c0_9] : memref<32x128xbf16, #tpu.memory_space<vmem>>, vector<32x128xbf16>
    tpu.vector_store %arg5[%c0_8, %c0_9], %12 {strides = array<i32>} : memref<32x128xbf16, #tpu.memory_space<vmem>>, vector<32x128xbf16>,
    return
  }
  func.func @transform_0(%arg0: i32) -> (i32, i32) {
    %c0_i32 = arith.constant 0 : i32
    %c0_i32_0 = arith.constant 0 : i32
    return %arg0, %c0_i32 : i32, i32
  }
  func.func @transform_1(%arg0: i32) -> (i32, i32) {
    %c0_i32 = arith.constant 0 : i32
    %c0_i32_0 = arith.constant 0 : i32
    %c0_i32_1 = arith.constant 0 : i32
    return %c0_i32, %c0_i32_0 : i32, i32
  }
  func.func @transform_2(%arg0: i32) -> (i32, i32) {
    %c0_i32 = arith.constant 0 : i32
    %c0_i32_0 = arith.constant 0 : i32
    %c0_i32_1 = arith.constant 0 : i32
    return %c0_i32, %c0_i32_0 : i32, i32
  }
  func.func @transform_3(%arg0: i32) -> (i32, i32) {
    %c0_i32 = arith.constant 0 : i32
    %c0_i32_0 = arith.constant 0 : i32
    %c0_i32_1 = arith.constant 0 : i32
    return %c0_i32, %c0_i32_0 : i32, i32
  }
  func.func @transform_4(%arg0: i32) -> (i32, i32) {
    %c0_i32 = arith.constant 0 : i32
    %c0_i32_0 = arith.constant 0 : i32
    return %arg0, %c0_i32 : i32, i32
  }
}

module attributes {stable_mosaic.version = 11 : i64} {
  func.func @_fused_matmul_kernel(%arg0: i32, %arg1: memref<32x144xbf16, #tpu.memory_space<vmem>>, %arg2: memref<144x512xbf16, #tpu.memory_space<vmem>>, %arg3: memref<1x512xf32, #tpu.memory_space<vmem>>, %arg4: memref<1x512xf32, #tpu.memory_space<vmem>>, %arg5: memref<32x512xbf16, #tpu.memory_space<vmem>>) attributes {dimension_semantics = [#tpu.dimension_semantics<parallel>], iteration_bounds = array<i64: 1>, scalar_prefetch = 0 : i64, scratch_operands = 0 : i64, tpu.core_type = #tpu.core_type<tc>, window_params = [{transform_indices = @transform_0, window_bounds = array<i64: 32, 144>}, {pipeline_mode = #tpu.pipeline_mode<synchronous>, transform_indices = @transform_1, window_bounds = array<i64: 144, 512>}, {pipeline_mode = #tpu.pipeline_mode<synchronous>, transform_indices = @transform_2, window_bounds = array<i64: 1, 512>}, {pipeline_mode = #tpu.pipeline_mode<synchronous>, transform_indices = @transform_3, window_bounds = array<i64: 1, 512>}, {transform_indices = @transform_4, window_bounds = array<i64: 32, 512>}]} {
    %c0 = arith.constant 0 : index
    %c0_0 = arith.constant 0 : index
    %0 = vector.load %arg1[%c0, %c0_0] : memref<32x144xbf16, #tpu.memory_space<vmem>>, vector<32x144xbf16>
    %c0_1 = arith.constant 0 : index
    %c0_2 = arith.constant 0 : index
    %1 = vector.load %arg2[%c0_1, %c0_2] : memref<144x512xbf16, #tpu.memory_space<vmem>>, vector<144x512xbf16>
    %cst = arith.constant dense<0.000000e+00> : vector<32x512xf32>
    %2 = tpu.matmul %0, %1, %cst {dimension_numbers = #tpu.dot_dimension_numbers<[1], [0], [0], [1], [0, 0, 1, 1], [], []>} : vector<32x144xbf16>, vector<144x512xbf16>, vector<32x512xf32> -> vector<32x512xf32>
    %c0_3 = arith.constant 0 : index
    %c0_4 = arith.constant 0 : index
    %3 = vector.load %arg3[%c0_3, %c0_4] : memref<1x512xf32, #tpu.memory_space<vmem>>, vector<1x512xf32>
    %4 = vector.broadcast %3 : vector<1x512xf32> to vector<32x512xf32>
    %5 = arith.mulf %2, %4 : vector<32x512xf32>
    %c0_5 = arith.constant 0 : index
    %c0_6 = arith.constant 0 : index
    %6 = vector.load %arg4[%c0_5, %c0_6] : memref<1x512xf32, #tpu.memory_space<vmem>>, vector<1x512xf32>
    %7 = vector.broadcast %6 : vector<1x512xf32> to vector<32x512xf32>
    %8 = arith.addf %5, %7 : vector<32x512xf32>
    %cst_7 = arith.constant 5.000000e-02 : f32
    %9 = vector.broadcast %cst_7 : f32 to vector<32x512xf32>
    %10 = arith.mulf %9, %8 : vector<32x512xf32>
    %11 = arith.maximumf %8, %10 : vector<32x512xf32>
    %12 = arith.truncf %11 : vector<32x512xf32> to vector<32x512xbf16>
    %c0_8 = arith.constant 0 : index
    %c0_9 = arith.constant 0 : index
    %13 = vector.load %arg5[%c0_8, %c0_9] : memref<32x512xbf16, #tpu.memory_space<vmem>>, vector<32x512xbf16>
    tpu.vector_store %arg5[%c0_8, %c0_9], %12 {strides = array<i32>} : memref<32x512xbf16, #tpu.memory_space<vmem>>, vector<32x512xbf16>,
    return
  }
  func.func @transform_0(%arg0: i32) -> (i32, i32) {
    %c0_i32 = arith.constant 0 : i32
    %c0_i32_0 = arith.constant 0 : i32
    return %arg0, %c0_i32 : i32, i32
  }
  func.func @transform_1(%arg0: i32) -> (i32, i32) {
    %c0_i32 = arith.constant 0 : i32
    %c0_i32_0 = arith.constant 0 : i32
    %c0_i32_1 = arith.constant 0 : i32
    return %c0_i32, %c0_i32_0 : i32, i32
  }
  func.func @transform_2(%arg0: i32) -> (i32, i32) {
    %c0_i32 = arith.constant 0 : i32
    %c0_i32_0 = arith.constant 0 : i32
    %c0_i32_1 = arith.constant 0 : i32
    return %c0_i32, %c0_i32_0 : i32, i32
  }
  func.func @transform_3(%arg0: i32) -> (i32, i32) {
    %c0_i32 = arith.constant 0 : i32
    %c0_i32_0 = arith.constant 0 : i32
    %c0_i32_1 = arith.constant 0 : i32
    return %c0_i32, %c0_i32_0 : i32, i32
  }
  func.func @transform_4(%arg0: i32) -> (i32, i32) {
    %c0_i32 = arith.constant 0 : i32
    %c0_i32_0 = arith.constant 0 : i32
    return %arg0, %c0_i32 : i32, i32
  }
}

module attributes {stable_mosaic.version = 11 : i64} {
  func.func @_fused_matmul_kernel(%arg0: i32, %arg1: memref<64x72xbf16, #tpu.memory_space<vmem>>, %arg2: memref<72x512xbf16, #tpu.memory_space<vmem>>, %arg3: memref<1x512xf32, #tpu.memory_space<vmem>>, %arg4: memref<1x512xf32, #tpu.memory_space<vmem>>, %arg5: memref<64x512xf32, #tpu.memory_space<vmem>>) attributes {dimension_semantics = [#tpu.dimension_semantics<parallel>], iteration_bounds = array<i64: 2>, scalar_prefetch = 0 : i64, scratch_operands = 0 : i64, tpu.core_type = #tpu.core_type<tc>, window_params = [{transform_indices = @transform_0, window_bounds = array<i64: 64, 72>}, {pipeline_mode = #tpu.pipeline_mode<synchronous>, transform_indices = @transform_1, window_bounds = array<i64: 72, 512>}, {pipeline_mode = #tpu.pipeline_mode<synchronous>, transform_indices = @transform_2, window_bounds = array<i64: 1, 512>}, {pipeline_mode = #tpu.pipeline_mode<synchronous>, transform_indices = @transform_3, window_bounds = array<i64: 1, 512>}, {transform_indices = @transform_4, window_bounds = array<i64: 64, 512>}]} {
    %c0 = arith.constant 0 : index
    %c0_0 = arith.constant 0 : index
    %0 = vector.load %arg1[%c0, %c0_0] : memref<64x72xbf16, #tpu.memory_space<vmem>>, vector<64x72xbf16>
    %c0_1 = arith.constant 0 : index
    %c0_2 = arith.constant 0 : index
    %1 = vector.load %arg2[%c0_1, %c0_2] : memref<72x512xbf16, #tpu.memory_space<vmem>>, vector<72x512xbf16>
    %cst = arith.constant dense<0.000000e+00> : vector<64x512xf32>
    %2 = tpu.matmul %0, %1, %cst {dimension_numbers = #tpu.dot_dimension_numbers<[1], [0], [0], [1], [0, 0, 1, 1], [], []>} : vector<64x72xbf16>, vector<72x512xbf16>, vector<64x512xf32> -> vector<64x512xf32>
    %c0_3 = arith.constant 0 : index
    %c0_4 = arith.constant 0 : index
    %3 = vector.load %arg3[%c0_3, %c0_4] : memref<1x512xf32, #tpu.memory_space<vmem>>, vector<1x512xf32>
    %4 = vector.broadcast %3 : vector<1x512xf32> to vector<64x512xf32>
    %5 = arith.mulf %2, %4 : vector<64x512xf32>
    %c0_5 = arith.constant 0 : index
    %c0_6 = arith.constant 0 : index
    %6 = vector.load %arg4[%c0_5, %c0_6] : memref<1x512xf32, #tpu.memory_space<vmem>>, vector<1x512xf32>
    %7 = vector.broadcast %6 : vector<1x512xf32> to vector<64x512xf32>
    %8 = arith.addf %5, %7 : vector<64x512xf32>
    %9 = math.tanh %8 : vector<64x512xf32>
    %c0_7 = arith.constant 0 : index
    %c0_8 = arith.constant 0 : index
    %10 = vector.load %arg5[%c0_7, %c0_8] : memref<64x512xf32, #tpu.memory_space<vmem>>, vector<64x512xf32>
    tpu.vector_store %arg5[%c0_7, %c0_8], %9 {strides = array<i32>} : memref<64x512xf32, #tpu.memory_space<vmem>>, vector<64x512xf32>,
    return
  }
  func.func @transform_0(%arg0: i32) -> (i32, i32) {
    %c0_i32 = arith.constant 0 : i32
    %c0_i32_0 = arith.constant 0 : i32
    return %arg0, %c0_i32 : i32, i32
  }
  func.func @transform_1(%arg0: i32) -> (i32, i32) {
    %c0_i32 = arith.constant 0 : i32
    %c0_i32_0 = arith.constant 0 : i32
    %c0_i32_1 = arith.constant 0 : i32
    return %c0_i32, %c0_i32_0 : i32, i32
  }
  func.func @transform_2(%arg0: i32) -> (i32, i32) {
    %c0_i32 = arith.constant 0 : i32
    %c0_i32_0 = arith.constant 0 : i32
    %c0_i32_1 = arith.constant 0 : i32
    return %c0_i32, %c0_i32_0 : i32, i32
  }
  func.func @transform_3(%arg0: i32) -> (i32, i32) {
    %c0_i32 = arith.constant 0 : i32
    %c0_i32_0 = arith.constant 0 : i32
    %c0_i32_1 = arith.constant 0 : i32
    return %c0_i32, %c0_i32_0 : i32, i32
  }
  func.func @transform_4(%arg0: i32) -> (i32, i32) {
    %c0_i32 = arith.constant 0 : i32
    %c0_i32_0 = arith.constant 0 : i32
    return %arg0, %c0_i32 : i32, i32
  }
}

</mosaic_0001>

<bundles_post_ra>
// kernel: generator_forward.6
= control target key start
LH: loop header
LB: loop body
LE: loop exit
PB: predicated region body
PF: predicated region fallthrough
CT: control target
= control target key end

     0   :  { %s582_s15 = smov 0   ;;  %s615_s0 = inlined_call_operand.vmem [shape: bf16[128,16], index: 0, kind: input, shape index: {}]   ;;  %s616_s1 = inlined_call_operand.vmem [shape: bf16[16,128], index: 1, kind: input, shape index: {}]   ;;  %s617_s2 = inlined_call_operand.vmem [shape: f32[1,128], index: 2, kind: input, shape index: {}]   ;;  %s618_s3 = inlined_call_operand.vmem [shape: f32[1,128], index: 3, kind: input, shape index: {}]   ;;  %s619_s4 = inlined_call_operand.vmem [shape: bf16[128,128], index: 4, kind: output, shape index: {}]  }
   0x1 LB: > { %s458_s16 = sadd.s32 4294967295, %s555_s15   ;;  %p462_p0 = scmp.ge.s32.totalorder %s555_s15, 1  ;;  %s555_s15 = sphi %s582_s15, %s14_s15  }
   0x2   : > { %p163_p1 = scmp.lt.s32.totalorder %s555_s15, 3 }
   0x4   : > { %p164_p2 = pnand %p462_p0, %p163_p1 }
   0x5   : > { %s463_s19 = sshll.u32 (!%p164_p2), %s458_s16, 3 }
   0x6   : > { %167 = sbr.rel (%p164_p2) target bundleno = 226 (0xe2), region = 36  ;;  %p190_p3 = scmp.lt.s32.totalorder (!%p164_p2), %s463_s19, 15 }
   0xb   : > { %v544_v0 = vld [vmem:[%s616_s1] sm:$0xff]   ;;  %s621_s19 = smov (!%p190_p3, %s463_s19), 15  ;;  %vm238_vm0 = vcmask 130048  }
   0xc   : > { %524 = vmatprep.subr.bf16.mxu0 %v544_v0  ;;  %534 = vmatprep.subr.bf16.mxu1 %v544_v0  ;;  %s464_s20 = sshll.u32 %s621_s19, 2  ;;  %v476_v5 = vld [vmem:[%s617_s2] ss:$0 sm:$0xff] }
   0xd   : > { %525 = vmatpush3.bf16.msra.mxu0 %v544_v0  ;;  %535 = vmatpush3.bf16.msra.mxu1 %v544_v0  ;;  %s193_s23 = scalar_lea.vmem %s615_s0, %s464_s20  ;;  %v477_v7 = vld [vmem:[%s618_s3] ss:$0 sm:$0xff]  ;;  %s199_s30 = scalar_lea.vmem %s619_s4, %s464_s20 }
   0xe   : > { %v545_v1 = vld [vmem:[%s193_s23] sm:$0xff]   ;;  %v546_v2 = vld [vmem:[%s193_s23 + $0x10] sm:$0xff]   ;;  %v547_v3 = vld [vmem:[%s193_s23 + $0x8] sm:$0xff]  }
   0xf   : > { %526 = vmatprep.mubr.msk.bf16.mxu0 %vm238_vm0, %v545_v1  ;;  %530 = vmatprep.mubr.msk.bf16.mxu1 %vm238_vm0, %v546_v2  ;;  %v548_v4 = vld [vmem:[%s193_s23 + $0x18] sm:$0xff]  }
  0x10   : > { %527 = vmatmul.mubr.msk.bf16.vlgmr.msra.gmra.mxu0 %vm238_vm0, %v547_v3  ;;  %531 = vmatmul.mubr.msk.bf16.vlgmr.msra.gmra.mxu1 %vm238_vm0, %v548_v4 }
  0xd0   : > { %v528_v6 = vpop.f32.mrf.mxu0  ;;  %v532_v9 = vpop.f32.mrf.mxu1 }
  0xd1   : > { %v325_v8 = vmul.f32 %v528_v6, %v476_v5  ;;  %v329_v10 = vmul.f32 %v532_v9, %v476_v5 }
  0xd2   : > { %v285_v11 = vpop.f32.mrf.mxu0  ;;  %v301_v14 = vpop.f32.mrf.mxu1 }
  0xd3   : > { %v340_v12 = vadd.f32 %v477_v7, %v325_v8  ;;  %v323_v13 = vmul.f32 %v476_v5, %v285_v11  ;;  %v344_v15 = vadd.f32 %v477_v7, %v329_v10  ;;  %v327_v16 = vmul.f32 %v476_v5, %v301_v14 }
  0xd4   : > { %v529_v17 = vpop.f32.mrf.mxu0  ;;  %v533_v20 = vpop.f32.mrf.mxu1 }
  0xd5   : > { %v338_v18 = vadd.f32 %v477_v7, %v323_v13  ;;  %v326_v19 = vmul.f32 %v529_v17, %v476_v5  ;;  %v342_v21 = vadd.f32 %v477_v7, %v327_v16  ;;  %v330_v22 = vmul.f32 %v533_v20, %v476_v5 }
  0xd6   : > { %v288_v23 = vpop.f32.mrf.mxu0  ;;  %v348_v24 = vmul.f32 0.05, %v340_v12  ;;  %v304_v27 = vpop.f32.mrf.mxu1  ;;  %v352_v28 = vmul.f32 0.05, %v344_v15 }
  0xd7   : > { %v341_v25 = vadd.f32 %v477_v7, %v326_v19  ;;  %v324_v26 = vmul.f32 %v476_v5, %v288_v23  ;;  %v345_v29 = vadd.f32 %v477_v7, %v330_v22  ;;  %v328_v30 = vmul.f32 %v476_v5, %v304_v27 }
  0xd8   : > { %v346_v31 = vmul.f32 0.05, %v338_v18  ;;  %v350_v34 = vmul.f32 0.05, %v342_v21  ;;  %v356_v37 = vmax.f32 %v340_v12, %v348_v24  ;;  %v360_v40 = vmax.f32 %v344_v15, %v352_v28 }
  0xd9   : > { %v349_v32 = vmul.f32 0.05, %v341_v25  ;;  %v339_v33 = vadd.f32 %v477_v7, %v324_v26  ;;  %v353_v35 = vmul.f32 0.05, %v345_v29  ;;  %v343_v36 = vadd.f32 %v477_v7, %v328_v30 }
  0xda   : > { %v354_v43 = vmax.f32 %v338_v18, %v346_v31  ;;  %v358_v46 = vmax.f32 %v342_v21, %v350_v34 }
  0xdb   : > { %v357_v38 = vmax.f32 %v341_v25, %v349_v32  ;;  %v347_v39 = vmul.f32 0.05, %v339_v33  ;;  %v361_v41 = vmax.f32 %v345_v29, %v353_v35  ;;  %v351_v42 = vmul.f32 0.05, %v343_v36 }
  0xdd   : > { %v504_v44 = vpack.c.bf16 %v357_v38, %v356_v37  ;;  %v355_v45 = vmax.f32 %v339_v33, %v347_v39  ;;  %v514_v47 = vpack.c.bf16 %v361_v41, %v360_v40  ;;  %v359_v48 = vmax.f32 %v343_v36, %v351_v42 }
  0xdf   : > { %516 = vst [vmem:[%s199_s30 + $0x8] sm:$0xff] %v504_v44   ;;  %v499_v49 = vpack.c.bf16 %v355_v45, %v354_v43  ;;  %518 = vst [vmem:[%s199_s30 + $0x18] sm:$0xff] %v514_v47   ;;  %v509_v50 = vpack.c.bf16 %v359_v48, %v358_v46 }
  0xe1   : > { %500 = vst [vmem:[%s199_s30] sm:$0xff] %v499_v49   ;;  %517 = vst [vmem:[%s199_s30 + $0x10] sm:$0xff] %v509_v50  }
  0xe2 PF: > { %s14_s15 = sadd.s32 1, %s555_s15  }
  0xe3   : > { %p11_p4 = scmp.ge.s32.totalorder %s14_s15, 4  }
  0xe5   :  { %13 = sbr.rel (!%p11_p4) target bundleno = 1 (0x1), region = 66 }

// kernel: generator_forward.7
= control target key start
LH: loop header
LB: loop body
LE: loop exit
PB: predicated region body
PF: predicated region fallthrough
CT: control target
= control target key end

     0   :  { %s339_s1 = inlined_call_operand.vmem [shape: bf16[128,128], index: 1, kind: input, shape index: {}]   ;;  %s340_s0 = inlined_call_operand.vmem [shape: bf16[32,128], index: 0, kind: input, shape index: {}]   ;;  %s341_s2 = inlined_call_operand.vmem [shape: f32[1,128], index: 2, kind: input, shape index: {}]   ;;  %s342_s3 = inlined_call_operand.vmem [shape: f32[1,128], index: 3, kind: input, shape index: {}]   ;;  %s343_s4 = inlined_call_operand.vmem [shape: bf16[32,128], index: 4, kind: output, shape index: {}]  }
   0x1   :  { %v262_v0 = vld [vmem:[%s339_s1 + $0x38] sm:$0xff]   ;;  %v263_v1 = vld [vmem:[%s339_s1 + $0x30] sm:$0xff]   ;;  %v264_v2 = vld [vmem:[%s339_s1 + $0x28] sm:$0xff]  }
   0x2   :  { %242 = vmatprep.subr.bf16.mxu0 %v262_v0  ;;  %v265_v3 = vld [vmem:[%s339_s1 + $0x20] sm:$0xff]   ;;  %v266_v5 = vld [vmem:[%s339_s1 + $0x18] sm:$0xff]   ;;  %v267_v6 = vld [vmem:[%s339_s1 + $0x10] sm:$0xff]  }
   0x3   :  { %243 = vmatpush3.bf16.msra.mxu0 %v262_v0  ;;  %v270_v4 = vld [vmem:[%s340_s0] sm:$0xff]   ;;  %v268_v7 = vld [vmem:[%s339_s1 + $0x8] sm:$0xff]  }
   0x4   :  { %244 = vmatprep.subr.bf16.mxu0 %v263_v1  ;;  %258 = vmatprep.mubr.bf16.mxu0 %v270_v4  ;;  %v269_v8 = vld [vmem:[%s339_s1] sm:$0xff]   ;;  %v271_v9 = vld [vmem:[%s340_s0 + $0x8] sm:$0xff]  }
   0x5   :  { %v211_v10 = vld [vmem:[%s341_s2] ss:$0 sm:$0xff] }
   0x6   :  { %v212_v12 = vld [vmem:[%s342_s3] ss:$0 sm:$0xff] }
   0x7   :  { %245 = vmatpush3.bf16.msra.mxu0 %v263_v1 }
   0x8   :  { %246 = vmatprep.subr.bf16.mxu0 %v264_v2 }
   0xb   :  { %247 = vmatpush3.bf16.msra.mxu0 %v264_v2 }
   0xc   :  { %248 = vmatprep.subr.bf16.mxu0 %v265_v3 }
   0xf   :  { %249 = vmatpush3.bf16.msra.mxu0 %v265_v3 }
  0x10   :  { %250 = vmatprep.subr.bf16.mxu0 %v266_v5 }
  0x13   :  { %251 = vmatpush3.bf16.msra.mxu0 %v266_v5 }
  0x14   :  { %252 = vmatprep.subr.bf16.mxu0 %v267_v6 }
  0x17   :  { %253 = vmatpush3.bf16.msra.mxu0 %v267_v6 }
  0x18   :  { %254 = vmatprep.subr.bf16.mxu0 %v268_v7 }
  0x1b   :  { %255 = vmatpush3.bf16.msra.mxu0 %v268_v7 }
  0x1c   :  { %256 = vmatprep.subr.bf16.mxu0 %v269_v8 }
  0x1f   :  { %257 = vmatpush3.bf16.msra.mxu0 %v269_v8 }
  0x22   :  { %259 = vmatmul.mubr.bf16.vlgmr.msra.gmra.mxu0 %v271_v9 }
  0xe2   :  { %v260_v11 = vpop.f32.mrf.mxu0 }
  0xe3   :  { %v156_v13 = vmul.f32 %v260_v11, %v211_v10 }
  0xe4   :  { %v132_v14 = vpop.f32.mrf.mxu0 }
  0xe5   :  { %v167_v15 = vadd.f32 %v212_v12, %v156_v13  ;;  %v154_v16 = vmul.f32 %v211_v10, %v132_v14 }
  0xe6   :  { %v261_v17 = vpop.f32.mrf.mxu0 }
  0xe7   :  { %v165_v18 = vadd.f32 %v212_v12, %v154_v16  ;;  %v157_v19 = vmul.f32 %v261_v17, %v211_v10  ;;  %v171_v21 = vmul.f32 0.05, %v167_v15 }
  0xe8   :  { %v135_v20 = vpop.f32.mrf.mxu0 }
  0xe9   :  { %v168_v22 = vadd.f32 %v212_v12, %v157_v19  ;;  %v155_v23 = vmul.f32 %v211_v10, %v135_v20  ;;  %v169_v24 = vmul.f32 0.05, %v165_v18  ;;  %v175_v27 = vmax.f32 %v167_v15, %v171_v21 }
  0xeb   :  { %v172_v25 = vmul.f32 0.05, %v168_v22  ;;  %v166_v26 = vadd.f32 %v212_v12, %v155_v23  ;;  %v173_v30 = vmax.f32 %v165_v18, %v169_v24 }
  0xed   :  { %v176_v28 = vmax.f32 %v168_v22, %v172_v25  ;;  %v170_v29 = vmul.f32 0.05, %v166_v26 }
  0xef   :  { %v229_v31 = vpack.c.bf16 %v176_v28, %v175_v27  ;;  %v174_v32 = vmax.f32 %v166_v26, %v170_v29 }
  0xf1   :  { %231 = vst [vmem:[%s343_s4 + $0x8] sm:$0xff] %v229_v31   ;;  %v224_v33 = vpack.c.bf16 %v174_v32, %v173_v30 }
  0xf3   :  { %225 = vst [vmem:[%s343_s4] sm:$0xff] %v224_v33  }

// kernel: generator_forward.8
= control target key start
LH: loop header
LB: loop body
LE: loop exit
PB: predicated region body
PF: predicated region fallthrough
CT: control target
= control target key end

     0   :  { %v292_v0 = vmov 0   ;;  %vm112_vm0 = vcmask 130048   ;;  %s369_s1 = inlined_call_operand.vmem [shape: bf16[144,128], index: 1, kind: input, shape index: {}]   ;;  %s370_s0 = inlined_call_operand.vmem [shape: bf16[32,144], index: 0, kind: input, shape index: {}]   ;;  %s371_s2 = inlined_call_operand.vmem [shape: f32[1,128], index: 2, kind: input, shape index: {}]   ;;  %s372_s3 = inlined_call_operand.vmem [shape: f32[1,128], index: 3, kind: input, shape index: {}]   ;;  %s373_s4 = inlined_call_operand.vmem [shape: bf16[32,128], index: 4, kind: output, shape index: {}]  }
   0x1   :  { %119 = vmatprep.subr.bf16.mxu0 %v292_v0  ;;  %258 = vmatprep.subr.bf16.mxu1 %v292_v0  ;;  %v277_v1 = vld [vmem:[%s369_s1 + $0x38] sm:$0xff]   ;;  %v278_v2 = vld [vmem:[%s369_s1 + $0x30] sm:$0xff]   ;;  %v279_v3 = vld [vmem:[%s369_s1 + $0x28] sm:$0xff]  }
   0x2   :  { %120 = vmatpush1.bf16.msra.mxu0 %v277_v1  ;;  %267 = vmatpush1.bf16.msra.mxu1 %v277_v1  ;;  %v280_v4 = vld [vmem:[%s369_s1 + $0x20] sm:$0xff]   ;;  %v291_v6 = vld [vmem:[%s370_s0 + $0x14] ss:$8 sps:$4 sm:$0xff]   ;;  %v283_v9 = vld [vmem:[%s369_s1 + $0x8] sm:$0xff]  }
   0x3   :  { %121 = vmatprep.subr.bf16.mxu0 %v292_v0  ;;  %259 = vmatprep.subr.bf16.mxu1 %v292_v0  ;;  %v288_v5 = vld [vmem:[%s370_s0 + $0x4] ss:$8 sps:$4 sm:$0xff]   ;;  %v281_v7 = vld [vmem:[%s369_s1 + $0x18] sm:$0xff]   ;;  %v282_v8 = vld [vmem:[%s369_s1 + $0x10] sm:$0xff]  }
   0x4   :  { %235 = vmatprep.mubr.msk.bf16.mxu0 %vm112_vm0, %v288_v5  ;;  %236 = vmatprep.mubr.msk.bf16.mxu1 %vm112_vm0, %v291_v6  ;;  %v284_v10 = vld [vmem:[%s369_s1] sm:$0xff]   ;;  %v289_v13 = vld [vmem:[%s370_s0 + $0x10] ss:$8 sps:$4 sm:$0xff]  }
   0x5   :  { %v285_v11 = vld [vmem:[%s369_s1 + $0x40] sm:$0xff]  }
   0x6   :  { %122 = vmatpush1.bf16.msra.mxu0 %v278_v2  ;;  %268 = vmatpush1.bf16.msra.mxu1 %v278_v2  ;;  %v286_v12 = vld [vmem:[%s370_s0] ss:$8 sps:$4 sm:$0xff]  }
   0x7   :  { %123 = vmatprep.subr.bf16.mxu0 %v292_v0  ;;  %260 = vmatprep.subr.bf16.mxu1 %v292_v0  ;;  %v237_v14 = vld [vmem:[%s371_s2] ss:$0 sm:$0xff] }
   0x8   :  { %v238_v16 = vld [vmem:[%s372_s3] ss:$0 sm:$0xff] }
   0xa   :  { %124 = vmatpush1.bf16.msra.mxu0 %v279_v3  ;;  %269 = vmatpush1.bf16.msra.mxu1 %v279_v3 }
   0xb   :  { %125 = vmatprep.subr.bf16.mxu0 %v292_v0  ;;  %261 = vmatprep.subr.bf16.mxu1 %v292_v0 }
   0xe   :  { %126 = vmatpush1.bf16.msra.mxu0 %v280_v4  ;;  %270 = vmatpush1.bf16.msra.mxu1 %v280_v4 }
   0xf   :  { %127 = vmatprep.subr.bf16.mxu0 %v292_v0  ;;  %262 = vmatprep.subr.bf16.mxu1 %v292_v0 }
  0x12   :  { %128 = vmatpush1.bf16.msra.mxu0 %v281_v7  ;;  %271 = vmatpush1.bf16.msra.mxu1 %v281_v7 }
  0x13   :  { %129 = vmatprep.subr.bf16.mxu0 %v292_v0  ;;  %263 = vmatprep.subr.bf16.mxu1 %v292_v0 }
  0x16   :  { %130 = vmatpush1.bf16.msra.mxu0 %v282_v8  ;;  %272 = vmatpush1.bf16.msra.mxu1 %v282_v8 }
  0x17   :  { %131 = vmatprep.subr.bf16.mxu0 %v292_v0  ;;  %264 = vmatprep.subr.bf16.mxu1 %v292_v0 }
  0x1a   :  { %132 = vmatpush1.bf16.msra.mxu0 %v283_v9  ;;  %273 = vmatpush1.bf16.msra.mxu1 %v283_v9 }
  0x1b   :  { %133 = vmatprep.subr.bf16.mxu0 %v292_v0  ;;  %265 = vmatprep.subr.bf16.mxu1 %v292_v0 }
  0x1e   :  { %134 = vmatpush1.bf16.msra.mxu0 %v284_v10  ;;  %274 = vmatpush1.bf16.msra.mxu1 %v284_v10 }
  0x1f   :  { %149 = vmatprep.subr.bf16.mxu0 %v292_v0  ;;  %266 = vmatprep.subr.bf16.mxu1 %v292_v0 }
  0x22   :  { %150 = vmatpush2.bf16.msra.mxu0 %v285_v11  ;;  %275 = vmatpush2.bf16.msra.mxu1 %v285_v11 }
  0x25   :  { %152 = vmatmul.mubr.bf16.vlgmr.msra.gmra.mxu0 %v286_v12  ;;  %160 = vmatmul.mubr.bf16.vlgmr.msra.gmra.mxu1 %v289_v13 }
  0xe5   :  { %v153_v15 = vpop.f32.mrf.mxu0  ;;  %v161_v17 = vpop.f32.mrf.mxu1 }
  0xe6   :  { %v175_v18 = vmul.f32 %v237_v14, %v153_v15  ;;  %v177_v19 = vmul.f32 %v237_v14, %v161_v17 }
  0xe7   :  { %v155_v20 = vpop.f32.mrf.mxu0  ;;  %v163_v21 = vpop.f32.mrf.mxu1 }
  0xe8   :  { %v186_v22 = vadd.f32 %v238_v16, %v175_v18  ;;  %v188_v23 = vadd.f32 %v238_v16, %v177_v19 }
  0xe9   :  { %v156_v24 = vpop.f32.mrf.mxu0  ;;  %v164_v25 = vpop.f32.mrf.mxu1 }
  0xea   :  { %v176_v26 = vmul.f32 %v237_v14, %v156_v24  ;;  %v178_v27 = vmul.f32 %v237_v14, %v164_v25  ;;  %v190_v30 = vmul.f32 0.05, %v186_v22  ;;  %v192_v31 = vmul.f32 0.05, %v188_v23 }
  0xeb   :  { %v158_v28 = vpop.f32.mrf.mxu0  ;;  %v166_v29 = vpop.f32.mrf.mxu1 }
  0xec   :  { %v187_v32 = vadd.f32 %v238_v16, %v176_v26  ;;  %v189_v33 = vadd.f32 %v238_v16, %v178_v27  ;;  %v194_v36 = vmax.f32 %v186_v22, %v190_v30  ;;  %v196_v37 = vmax.f32 %v188_v23, %v192_v31 }
  0xee   :  { %v191_v34 = vmul.f32 0.05, %v187_v32  ;;  %v193_v35 = vmul.f32 0.05, %v189_v33 }
  0xf0   :  { %v195_v38 = vmax.f32 %v187_v32, %v191_v34  ;;  %v197_v39 = vmax.f32 %v189_v33, %v193_v35 }
  0xf2   :  { %v250_v40 = vpack.c.bf16 %v195_v38, %v194_v36  ;;  %v255_v41 = vpack.c.bf16 %v197_v39, %v196_v37 }
  0xf4   :  { %251 = vst [vmem:[%s373_s4] sm:$0xff] %v250_v40   ;;  %257 = vst [vmem:[%s373_s4 + $0x8] sm:$0xff] %v255_v41  }

// kernel: generator_forward.10
= control target key start
LH: loop header
LB: loop body
LE: loop exit
PB: predicated region body
PF: predicated region fallthrough
CT: control target
= control target key end

     0   :  { %vm256_vm0 = vcmask 130048   ;;  %v371_v40 = vlaneseq  ;;  %s884_s1 = inlined_call_operand.vmem [shape: bf16[144,512], index: 1, kind: input, shape index: {}]   ;;  %s885_s0 = inlined_call_operand.vmem [shape: bf16[32,144], index: 0, kind: input, shape index: {}]   ;;  %s886_s2 = inlined_call_operand.vmem [shape: f32[1,512], index: 2, kind: input, shape index: {}]   ;;  %s887_s3 = inlined_call_operand.vmem [shape: f32[1,512], index: 3, kind: input, shape index: {}]   ;;  %s888_s4 = inlined_call_operand.vmem [shape: bf16[32,512], index: 4, kind: output, shape index: {}]  }
   0x1   :  { %v597_v0 = vld [vmem:[%s884_s1 + $0xe4] ss:$16 sps:$4 sm:$0xff]   ;;  %v599_v1 = vld [vmem:[%s884_s1 + $0xec] ss:$16 sps:$4 sm:$0xff]   ;;  %v601_v2 = vld [vmem:[%s884_s1 + $0xe0] ss:$16 sps:$4 sm:$0xff]  }
   0x2   :  { %263 = vmatprep.subr.bf16.mxu0 %v597_v0  ;;  %v602_v3 = vld [vmem:[%s884_s1 + $0xe8] ss:$16 sps:$4 sm:$0xff]   ;;  %316 = vmatprep.subr.bf16.mxu1 %v599_v1  ;;  %v603_v4 = vld [vmem:[%s884_s1 + $0xc4] ss:$16 sps:$4 sm:$0xff]   ;;  %v605_v5 = vld [vmem:[%s884_s1 + $0xcc] ss:$16 sps:$4 sm:$0xff]  }
   0x3   :  { %264 = vmatpush1.bf16.msra.mxu0 %v601_v2  ;;  %317 = vmatpush1.bf16.msra.mxu1 %v602_v3  ;;  %v607_v6 = vld [vmem:[%s884_s1 + $0xc0] ss:$16 sps:$4 sm:$0xff]   ;;  %v608_v7 = vld [vmem:[%s884_s1 + $0xc8] ss:$16 sps:$4 sm:$0xff]   ;;  %v609_v8 = vld [vmem:[%s884_s1 + $0xa4] ss:$16 sps:$4 sm:$0xff]  }
   0x4   :  { %265 = vmatprep.subr.bf16.mxu0 %v603_v4  ;;  %318 = vmatprep.subr.bf16.mxu1 %v605_v5  ;;  %v611_v9 = vld [vmem:[%s884_s1 + $0xac] ss:$16 sps:$4 sm:$0xff]   ;;  %v613_v10 = vld [vmem:[%s884_s1 + $0xa0] ss:$16 sps:$4 sm:$0xff]   ;;  %v614_v11 = vld [vmem:[%s884_s1 + $0xa8] ss:$16 sps:$4 sm:$0xff]  }
   0x5   :  { %v615_v12 = vld [vmem:[%s884_s1 + $0x84] ss:$16 sps:$4 sm:$0xff]   ;;  %v617_v13 = vld [vmem:[%s884_s1 + $0x8c] ss:$16 sps:$4 sm:$0xff]   ;;  %v619_v14 = vld [vmem:[%s884_s1 + $0x80] ss:$16 sps:$4 sm:$0xff]  }
   0x6   :  { %v620_v15 = vld [vmem:[%s884_s1 + $0x88] ss:$16 sps:$4 sm:$0xff]   ;;  %v621_v16 = vld [vmem:[%s884_s1 + $0x64] ss:$16 sps:$4 sm:$0xff]   ;;  %v623_v17 = vld [vmem:[%s884_s1 + $0x6c] ss:$16 sps:$4 sm:$0xff]  }
   0x7   :  { %266 = vmatpush1.bf16.msra.mxu0 %v607_v6  ;;  %319 = vmatpush1.bf16.msra.mxu1 %v608_v7  ;;  %v625_v18 = vld [vmem:[%s884_s1 + $0x60] ss:$16 sps:$4 sm:$0xff]   ;;  %v626_v19 = vld [vmem:[%s884_s1 + $0x68] ss:$16 sps:$4 sm:$0xff]   ;;  %v627_v20 = vld [vmem:[%s884_s1 + $0x44] ss:$16 sps:$4 sm:$0xff]  }
   0x8   :  { %267 = vmatprep.subr.bf16.mxu0 %v609_v8  ;;  %320 = vmatprep.subr.bf16.mxu1 %v611_v9  ;;  %v629_v21 = vld [vmem:[%s884_s1 + $0x4c] ss:$16 sps:$4 sm:$0xff]   ;;  %v631_v22 = vld [vmem:[%s884_s1 + $0x40] ss:$16 sps:$4 sm:$0xff]   ;;  %v632_v23 = vld [vmem:[%s884_s1 + $0x48] ss:$16 sps:$4 sm:$0xff]  }
   0x9   :  { %v633_v24 = vld [vmem:[%s884_s1 + $0x24] ss:$16 sps:$4 sm:$0xff]   ;;  %v635_v25 = vld [vmem:[%s884_s1 + $0x2c] ss:$16 sps:$4 sm:$0xff]   ;;  %v637_v26 = vld [vmem:[%s884_s1 + $0x20] ss:$16 sps:$4 sm:$0xff]  }
   0xa   :  { %v638_v27 = vld [vmem:[%s884_s1 + $0x28] ss:$16 sps:$4 sm:$0xff]   ;;  %v639_v28 = vld [vmem:[%s884_s1 + $0x4] ss:$16 sps:$4 sm:$0xff]   ;;  %v641_v29 = vld [vmem:[%s884_s1 + $0xc] ss:$16 sps:$4 sm:$0xff]  }
   0xb   :  { %268 = vmatpush1.bf16.msra.mxu0 %v613_v10  ;;  %321 = vmatpush1.bf16.msra.mxu1 %v614_v11  ;;  %v653_v30 = vld [vmem:[%s885_s0 + $0x4] ss:$8 sps:$4 sm:$0xff]   ;;  %v643_v31 = vld [vmem:[%s884_s1] ss:$16 sps:$4 sm:$0xff]   ;;  %v644_v32 = vld [vmem:[%s884_s1 + $0x8] ss:$16 sps:$4 sm:$0xff]  }
   0xc   :  { %269 = vmatprep.subr.bf16.mxu0 %v615_v12  ;;  %322 = vmatprep.subr.bf16.mxu1 %v617_v13  ;;  %v645_v33 = vld [vmem:[%s884_s1 + $0x104] ss:$16 sps:$4 sm:$0xff]   ;;  %v647_v34 = vld [vmem:[%s884_s1 + $0x10c] ss:$16 sps:$4 sm:$0xff]   ;;  %v649_v35 = vld [vmem:[%s884_s1 + $0x100] ss:$16 sps:$4 sm:$0xff]  }
   0xd   :  { %577 = vmatprep.mubr.msk.bf16.mxu0 %vm256_vm0, %v653_v30  ;;  %579 = vmatprep.mubr.msk.bf16.mxu1 %vm256_vm0, %v653_v30  ;;  %v650_v36 = vld [vmem:[%s884_s1 + $0x108] ss:$16 sps:$4 sm:$0xff]   ;;  %v654_v38 = vld [vmem:[%s885_s0 + $0x14] ss:$8 sps:$4 sm:$0xff]   ;;  %v372_v41 = vshrl.u32 %v371_v40, 7 }
   0xe   :  { %v651_v37 = vld [vmem:[%s885_s0] ss:$8 sps:$4 sm:$0xff]   ;;  %v656_v39 = vld [vmem:[%s885_s0 + $0x10] ss:$8 sps:$4 sm:$0xff]  }
   0xf   :  { %270 = vmatpush1.bf16.msra.mxu0 %v619_v14  ;;  %323 = vmatpush1.bf16.msra.mxu1 %v620_v15  ;;  %v373_v42 = vsub.s32 0, %v372_v41  ;;  %v381_v43 = vsub.s32 2, %v372_v41  ;;  %v369_v44 = vld [vmem:[%s886_s2] sm:$0xf]  ;;  %v377_v45 = vsub.s32 1, %v372_v41  ;;  %v385_v46 = vsub.s32 3, %v372_v41 }
  0x10   :  { %271 = vmatprep.subr.bf16.mxu0 %v621_v16  ;;  %324 = vmatprep.subr.bf16.mxu1 %v623_v17  ;;  %v407_v47 = vld [vmem:[%s887_s3] sm:$0xf] }
  0x11   :  { %v812_v48 = vrot.slane %v369_v44, %v373_v42  ;;  %v814_v49 = vrot.slane %v369_v44, %v381_v43  ;;  %v816_v50 = vrot.slane %v407_v47, %v373_v42  ;;  %v818_v51 = vrot.slane %v407_v47, %v381_v43 }
  0x12   :  { %v820_v52 = vrot.slane %v369_v44, %v377_v45  ;;  %v822_v53 = vrot.slane %v369_v44, %v385_v46  ;;  %v826_v58 = vrot.slane %v407_v47, %v377_v45  ;;  %v828_v59 = vrot.slane %v407_v47, %v385_v46 }
  0x13   :  { %272 = vmatpush1.bf16.msra.mxu0 %v625_v18  ;;  %325 = vmatpush1.bf16.msra.mxu1 %v626_v19 }
  0x14   :  { %273 = vmatprep.subr.bf16.mxu0 %v627_v20  ;;  %326 = vmatprep.subr.bf16.mxu1 %v629_v21 }
  0x17   :  { %274 = vmatpush1.bf16.msra.mxu0 %v631_v22  ;;  %327 = vmatpush1.bf16.msra.mxu1 %v632_v23 }
  0x18   :  { %275 = vmatprep.subr.bf16.mxu0 %v633_v24  ;;  %328 = vmatprep.subr.bf16.mxu1 %v635_v25 }
  0x1b   :  { %276 = vmatpush1.bf16.msra.mxu0 %v637_v26  ;;  %329 = vmatpush1.bf16.msra.mxu1 %v638_v27 }
  0x1c   :  { %277 = vmatprep.subr.bf16.mxu0 %v639_v28  ;;  %330 = vmatprep.subr.bf16.mxu1 %v641_v29 }
  0x1f   :  { %278 = vmatpush1.bf16.msra.mxu0 %v643_v31  ;;  %331 = vmatpush1.bf16.msra.mxu1 %v644_v32 }
  0x20   :  { %293 = vmatprep.subr.bf16.mxu0 %v645_v33  ;;  %346 = vmatprep.subr.bf16.mxu1 %v647_v34 }
  0x23   :  { %294 = vmatpush2.bf16.msra.mxu0 %v649_v35  ;;  %347 = vmatpush2.bf16.msra.mxu1 %v650_v36 }
  0x26   :  { %296 = vmatmul.mubr.bf16.vlgmr.msra.gmra.mxu0 %v651_v37  ;;  %349 = vmatmul.mubr.bf16.vlgmr.msra.gmra.mxu1 %v651_v37 }
  0x27   :  { %578 = vmatprep.mubr.msk.bf16.mxu0 %vm256_vm0, %v654_v38  ;;  %580 = vmatprep.mubr.msk.bf16.mxu1 %vm256_vm0, %v654_v38 }
  0x2e   :  { %306 = vmatmul.mubr.bf16.gmra.mxu0 %v656_v39  ;;  %359 = vmatmul.mubr.bf16.gmra.mxu1 %v656_v39 }
  0xe6   :  { %v297_v54 = vpop.f32.mrf.mxu0  ;;  %v350_v55 = vpop.f32.mrf.mxu1 }
  0xe7   :  { %v391_v56 = vmul.f32 %v812_v48, %v297_v54  ;;  %v393_v57 = vmul.f32 %v814_v49, %v350_v55 }
  0xe8   :  { %v299_v60 = vpop.f32.mrf.mxu0  ;;  %v352_v61 = vpop.f32.mrf.mxu1 }
  0xe9   :  { %v429_v62 = vadd.f32 %v816_v50, %v391_v56  ;;  %v431_v63 = vadd.f32 %v818_v51, %v393_v57  ;;  %v392_v0 = vmul.f32 %v820_v52, %v299_v60  ;;  %v394_v1 = vmul.f32 %v822_v53, %v352_v61 }
  0xea   :  { %v301_v2 = vpop.f32.mrf.mxu0  ;;  %v354_v3 = vpop.f32.mrf.mxu1 }
  0xeb   :  { %v445_v4 = vmul.f32 0.05, %v429_v62  ;;  %v447_v5 = vmul.f32 0.05, %v431_v63  ;;  %v430_v6 = vadd.f32 %v826_v58, %v392_v0  ;;  %v432_v7 = vadd.f32 %v828_v59, %v394_v1 }
  0xec   :  { %v395_v8 = vmul.f32 %v812_v48, %v301_v2  ;;  %v397_v9 = vmul.f32 %v814_v49, %v354_v3  ;;  %v303_v10 = vpop.f32.mrf.mxu0  ;;  %v356_v11 = vpop.f32.mrf.mxu1 }
  0xed   :  { %v461_v12 = vmax.f32 %v429_v62, %v445_v4  ;;  %v463_v13 = vmax.f32 %v431_v63, %v447_v5  ;;  %v446_v14 = vmul.f32 0.05, %v430_v6  ;;  %v448_v15 = vmul.f32 0.05, %v432_v7 }
  0xee   :  { %v433_v16 = vadd.f32 %v816_v50, %v395_v8  ;;  %v435_v17 = vadd.f32 %v818_v51, %v397_v9  ;;  %v396_v18 = vmul.f32 %v820_v52, %v303_v10  ;;  %v398_v19 = vmul.f32 %v822_v53, %v356_v11  ;;  %v307_v20 = vpop.f32.mrf.mxu0  ;;  %v360_v21 = vpop.f32.mrf.mxu1 }
  0xef   :  { %v462_v22 = vmax.f32 %v430_v6, %v446_v14  ;;  %v464_v23 = vmax.f32 %v432_v7, %v448_v15  ;;  %v399_v24 = vmul.f32 %v812_v48, %v307_v20  ;;  %v401_v25 = vmul.f32 %v814_v49, %v360_v21 }
  0xf0   :  { %v449_v26 = vmul.f32 0.05, %v433_v16  ;;  %v451_v27 = vmul.f32 0.05, %v435_v17  ;;  %v434_v28 = vadd.f32 %v826_v58, %v396_v18  ;;  %v436_v29 = vadd.f32 %v828_v59, %v398_v19  ;;  %v309_v30 = vpop.f32.mrf.mxu0  ;;  %v362_v31 = vpop.f32.mrf.mxu1 }
  0xf1   :  { %v589_v32 = vpack.c.bf16 %v462_v22, %v461_v12  ;;  %v590_v33 = vpack.c.bf16 %v464_v23, %v463_v13  ;;  %v437_v34 = vadd.f32 %v816_v50, %v399_v24  ;;  %v439_v35 = vadd.f32 %v818_v51, %v401_v25 }
  0xf2   :  { %v465_v36 = vmax.f32 %v433_v16, %v449_v26  ;;  %v467_v37 = vmax.f32 %v435_v17, %v451_v27  ;;  %v450_v38 = vmul.f32 0.05, %v434_v28  ;;  %v452_v39 = vmul.f32 0.05, %v436_v29  ;;  %v311_v40 = vpop.f32.mrf.mxu0  ;;  %v364_v41 = vpop.f32.mrf.mxu1 }
  0xf3   :  { %525 = vst [vmem:[%s888_s4] sm:$0xff] %v589_v32  ;;  %526 = vst [vmem:[%s888_s4 + $0x8] sm:$0xff] %v590_v33  ;;  %v453_v42 = vmul.f32 0.05, %v437_v34  ;;  %v455_v43 = vmul.f32 0.05, %v439_v35  ;;  %v400_v44 = vmul.f32 %v820_v52, %v309_v30  ;;  %v402_v45 = vmul.f32 %v822_v53, %v362_v31 }
  0xf4   :  { %v466_v46 = vmax.f32 %v434_v28, %v450_v38  ;;  %v468_v47 = vmax.f32 %v436_v29, %v452_v39  ;;  %v403_v54 = vmul.f32 %v812_v48, %v311_v40  ;;  %v405_v55 = vmul.f32 %v814_v49, %v364_v41  ;;  %v313_v56 = vpop.f32.mrf.mxu0  ;;  %v366_v57 = vpop.f32.mrf.mxu1 }
  0xf5   :  { %v438_v60 = vadd.f32 %v826_v58, %v400_v44  ;;  %v440_v61 = vadd.f32 %v828_v59, %v402_v45  ;;  %v404_v4 = vmul.f32 %v820_v52, %v313_v56  ;;  %v406_v48 = vmul.f32 %v822_v53, %v366_v57 }
  0xf6   :  { %v591_v62 = vpack.c.bf16 %v466_v46, %v465_v36  ;;  %v592_v63 = vpack.c.bf16 %v468_v47, %v467_v37  ;;  %v441_v0 = vadd.f32 %v816_v50, %v403_v54  ;;  %v443_v1 = vadd.f32 %v818_v51, %v405_v55 }
  0xf7   :  { %v454_v2 = vmul.f32 0.05, %v438_v60  ;;  %v456_v3 = vmul.f32 0.05, %v440_v61  ;;  %v469_v49 = vmax.f32 %v437_v34, %v453_v42  ;;  %v471_v5 = vmax.f32 %v439_v35, %v455_v43 }
  0xf8   :  { %527 = vst [vmem:[%s888_s4 + $0x10] sm:$0xff] %v591_v62  ;;  %528 = vst [vmem:[%s888_s4 + $0x18] sm:$0xff] %v592_v63  ;;  %v457_v6 = vmul.f32 0.05, %v441_v0  ;;  %v459_v50 = vmul.f32 0.05, %v443_v1  ;;  %v442_v8 = vadd.f32 %v826_v58, %v404_v4  ;;  %v444_v52 = vadd.f32 %v828_v59, %v406_v48 }
  0xf9   :  { %v470_v7 = vmax.f32 %v438_v60, %v454_v2  ;;  %v472_v51 = vmax.f32 %v440_v61, %v456_v3 }
  0xfa   :  { %v458_v10 = vmul.f32 0.05, %v442_v8  ;;  %v460_v11 = vmul.f32 0.05, %v444_v52  ;;  %v473_v12 = vmax.f32 %v441_v0, %v457_v6  ;;  %v475_v13 = vmax.f32 %v443_v1, %v459_v50 }
  0xfb   :  { %v593_v9 = vpack.c.bf16 %v470_v7, %v469_v49  ;;  %v594_v53 = vpack.c.bf16 %v472_v51, %v471_v5 }
  0xfc   :  { %v474_v14 = vmax.f32 %v442_v8, %v458_v10  ;;  %v476_v15 = vmax.f32 %v444_v52, %v460_v11 }
  0xfd   :  { %529 = vst [vmem:[%s888_s4 + $0x20] sm:$0xff] %v593_v9  ;;  %530 = vst [vmem:[%s888_s4 + $0x28] sm:$0xff] %v594_v53 }
  0xfe   :  { %v595_v16 = vpack.c.bf16 %v474_v14, %v473_v12  ;;  %v596_v58 = vpack.c.bf16 %v476_v15, %v475_v13 }
 0x100   :  { %531 = vst [vmem:[%s888_s4 + $0x30] sm:$0xff] %v595_v16  ;;  %532 = vst [vmem:[%s888_s4 + $0x38] sm:$0xff] %v596_v58 }

// kernel: generator_forward.11
= control target key start
LH: loop header
LB: loop body
LE: loop exit
PB: predicated region body
PF: predicated region fallthrough
CT: control target
= control target key end

     0   :  { %s928_s15 = smov 0   ;;  %s1141_s0 = inlined_call_operand.vmem [shape: bf16[128,72], index: 0, kind: input, shape index: {}]   ;;  %s1142_s1 = inlined_call_operand.vmem [shape: bf16[72,512], index: 1, kind: input, shape index: {}]   ;;  %s1143_s2 = inlined_call_operand.vmem [shape: f32[1,512], index: 2, kind: input, shape index: {}]   ;;  %s1144_s3 = inlined_call_operand.vmem [shape: f32[1,512], index: 3, kind: input, shape index: {}]   ;;  %s1145_s4 = inlined_call_operand.vmem [shape: f32[128,512], index: 4, kind: output, shape index: {}]  }
   0x1 LB: > { %s742_s16 = sadd.s32 4294967295, %s900_s15   ;;  %p746_p0 = scmp.ge.s32.totalorder %s900_s15, 1  ;;  %s900_s15 = sphi %s928_s15, %s14_s15  }
   0x2   : > { %p163_p1 = scmp.lt.s32.totalorder %s900_s15, 3 }
   0x4   : > { %p164_p2 = pnand %p746_p0, %p163_p1 }
   0x5   : > { %s747_s21 = sshll.u32 (!%p164_p2), %s742_s16, 3 }
   0x6   : > { %167 = sbr.rel (%p164_p2) target bundleno = 277 (0x115), region = 36  ;;  %p191_p3 = scmp.lt.s32.totalorder (!%p164_p2), %s747_s21, 15 }
   0xb   : > { %v228_v0 = vld [vmem:[%s1142_s1 + $0x80] sm:$0xff]  ;;  %vm353_vm0 = vcmask 1043456   ;;  %v229_v1 = vld [vmem:[%s1142_s1 + $0x88] sm:$0xff]  ;;  %v902_v7 = vmov 0   ;;  %s1147_s21 = smov (!%p191_p3, %s747_s21), 15  ;;  %vm340_vm1 = vcmask 588800   ;;  %v514_v29 = vlaneseq }
   0xc   : > { %v773_v2 = vcombine.high %v228_v0, %v228_v0  ;;  %v775_v3 = vcombine.high %v229_v1, %v229_v1  ;;  %v772_v4 = vcombine.low %v228_v0, %v228_v0  ;;  %v774_v5 = vcombine.low %v229_v1, %v229_v1  ;;  %v802_v6 = vld [vmem:[%s1142_s1 + $0x64] ss:$16 sps:$4 sm:$0xff]   ;;  %398 = vmatprep.mubr.bf16.mxu0 %v902_v7  ;;  %v804_v8 = vld [vmem:[%s1142_s1 + $0x6c] ss:$16 sps:$4 sm:$0xff]   ;;  %v806_v11 = vld [vmem:[%s1142_s1 + $0x60] ss:$16 sps:$4 sm:$0xff]  }
   0xd   : > { %471 = vmatprep.mubr.bf16.mxu1 %v902_v7  ;;  %v807_v12 = vld [vmem:[%s1142_s1 + $0x68] ss:$16 sps:$4 sm:$0xff]   ;;  %v808_v13 = vld [vmem:[%s1142_s1 + $0x44] ss:$16 sps:$4 sm:$0xff]   ;;  %v810_v14 = vld [vmem:[%s1142_s1 + $0x4c] ss:$16 sps:$4 sm:$0xff]  }
   0xe   : > { %776 = vmatprep.subr.msk.bf16.mxu0 %vm353_vm0, %v773_v2  ;;  %781 = vmatprep.subr.msk.bf16.mxu1 %vm353_vm0, %v775_v3  ;;  %v355_v9 = vsel %vm353_vm0, %v772_v4, 0  ;;  %v361_v10 = vsel %vm353_vm0, %v774_v5, 0  ;;  %v812_v15 = vld [vmem:[%s1142_s1 + $0x40] ss:$16 sps:$4 sm:$0xff]   ;;  %s748_s10 = sshll.u32 %s1147_s21, 2  ;;  %v515_v30 = vshrl.u32 %v514_v29, 7 }
   0xf   : > { %373 = vmatpush1.bf16.msra.mxu0 %v355_v9  ;;  %446 = vmatpush1.bf16.msra.mxu1 %v361_v10  ;;  %v813_v16 = vld [vmem:[%s1142_s1 + $0x48] ss:$16 sps:$4 sm:$0xff]   ;;  %v814_v17 = vld [vmem:[%s1142_s1 + $0x24] ss:$16 sps:$4 sm:$0xff]   ;;  %v816_v18 = vld [vmem:[%s1142_s1 + $0x2c] ss:$16 sps:$4 sm:$0xff]   ;;  %s985_s23 = scalar_lea.vmem %s1141_s0, %s748_s10 }
  0x10   : > { %374 = vmatprep.subr.bf16.mxu0 %v802_v6  ;;  %447 = vmatprep.subr.bf16.mxu1 %v804_v8  ;;  %v818_v19 = vld [vmem:[%s1142_s1 + $0x20] ss:$16 sps:$4 sm:$0xff]   ;;  %v819_v20 = vld [vmem:[%s1142_s1 + $0x28] ss:$16 sps:$4 sm:$0xff]   ;;  %v820_v21 = vld [vmem:[%s1142_s1 + $0x4] ss:$16 sps:$4 sm:$0xff]  }
  0x11   : > { %v822_v22 = vld [vmem:[%s1142_s1 + $0xc] ss:$16 sps:$4 sm:$0xff]   ;;  %v824_v23 = vld [vmem:[%s1142_s1] ss:$16 sps:$4 sm:$0xff]   ;;  %v825_v24 = vld [vmem:[%s1142_s1 + $0x8] ss:$16 sps:$4 sm:$0xff]  }
  0x12   : > { %v826_v25 = vld [vmem:[%s985_s23] sm:$0xff]   ;;  %v827_v26 = vld [vmem:[%s985_s23 + $0x8] sm:$0xff]   ;;  %v828_v27 = vld [vmem:[%s985_s23 + $0x10] sm:$0xff]   ;;  %v516_v31 = vsub.s32 0, %v515_v30  ;;  %v524_v32 = vsub.s32 2, %v515_v30  ;;  %v520_v34 = vsub.s32 1, %v515_v30 }
  0x13   : > { %375 = vmatpush1.bf16.msra.mxu0 %v806_v11  ;;  %448 = vmatpush1.bf16.msra.mxu1 %v807_v12  ;;  %v829_v28 = vld [vmem:[%s985_s23 + $0x18] sm:$0xff]   ;;  %v512_v33 = vld [vmem:[%s1143_s2] sm:$0xf]  ;;  %v528_v35 = vsub.s32 3, %v515_v30  ;;  %s788_s12 = sshll.u32 %s1147_s21, 5 }
  0x14   : > { %376 = vmatprep.subr.bf16.mxu0 %v808_v13  ;;  %449 = vmatprep.subr.bf16.mxu1 %v810_v14  ;;  %v566_v36 = vld [vmem:[%s1144_s3] sm:$0xf]  ;;  %v1020_v37 = vrot.slane %v512_v33, %v516_v31  ;;  %v1022_v38 = vrot.slane %v512_v33, %v524_v32  ;;  %v1028_v41 = vrot.slane %v512_v33, %v520_v34  ;;  %s1069_s14 = scalar_lea.vmem %s1145_s4, %s788_s12 }
  0x15   : > { %v1024_v39 = vrot.slane %v566_v36, %v516_v31  ;;  %v1026_v40 = vrot.slane %v566_v36, %v524_v32  ;;  %v1030_v42 = vrot.slane %v512_v33, %v528_v35  ;;  %v1034_v47 = vrot.slane %v566_v36, %v520_v34 }
  0x16   : > { %v1036_v48 = vrot.slane %v566_v36, %v528_v35 }
  0x17   : > { %377 = vmatpush1.bf16.msra.mxu0 %v812_v15  ;;  %450 = vmatpush1.bf16.msra.mxu1 %v813_v16 }
  0x18   : > { %378 = vmatprep.subr.bf16.mxu0 %v814_v17  ;;  %451 = vmatprep.subr.bf16.mxu1 %v816_v18 }
  0x1b   : > { %379 = vmatpush1.bf16.msra.mxu0 %v818_v19  ;;  %452 = vmatpush1.bf16.msra.mxu1 %v819_v20 }
  0x1c   : > { %380 = vmatprep.subr.bf16.mxu0 %v820_v21  ;;  %453 = vmatprep.subr.bf16.mxu1 %v822_v22 }
  0x1f   : > { %381 = vmatpush1.bf16.msra.mxu0 %v824_v23  ;;  %454 = vmatpush1.bf16.msra.mxu1 %v825_v24 }
  0x22   : > { %777 = vmatmul.mubr.msk.bf16.vlgmr.msra.gmra.mxu0 %vm340_vm1, %v826_v25  ;;  %782 = vmatmul.mubr.msk.bf16.vlgmr.msra.gmra.mxu1 %vm340_vm1, %v826_v25 }
  0x23   : > { %408 = vmatprep.mubr.bf16.mxu0 %v902_v7  ;;  %481 = vmatprep.mubr.bf16.mxu1 %v902_v7 }
  0x2a   : > { %778 = vmatmul.mubr.msk.bf16.gmra.mxu0 %vm340_vm1, %v827_v26  ;;  %783 = vmatmul.mubr.msk.bf16.gmra.mxu1 %vm340_vm1, %v827_v26 }
  0x2b   : > { %418 = vmatprep.mubr.bf16.mxu0 %v902_v7  ;;  %491 = vmatprep.mubr.bf16.mxu1 %v902_v7 }
  0x32   : > { %779 = vmatmul.mubr.msk.bf16.gmra.mxu0 %vm340_vm1, %v828_v27  ;;  %784 = vmatmul.mubr.msk.bf16.gmra.mxu1 %vm340_vm1, %v828_v27 }
  0x33   : > { %428 = vmatprep.mubr.bf16.mxu0 %v902_v7  ;;  %501 = vmatprep.mubr.bf16.mxu1 %v902_v7 }
  0x3a   : > { %780 = vmatmul.mubr.msk.bf16.gmra.mxu0 %vm340_vm1, %v829_v28  ;;  %785 = vmatmul.mubr.msk.bf16.gmra.mxu1 %vm340_vm1, %v829_v28 }
  0xe2   : > { %v400_v43 = vpop.f32.mrf.mxu0  ;;  %v473_v44 = vpop.f32.mrf.mxu1 }
  0xe3   : > { %v534_v45 = vmul.f32 %v1020_v37, %v400_v43  ;;  %v536_v46 = vmul.f32 %v1022_v38, %v473_v44 }
  0xe4   : > { %v402_v49 = vpop.f32.mrf.mxu0  ;;  %v475_v50 = vpop.f32.mrf.mxu1 }
  0xe5   : > { %v588_v51 = vadd.f32 %v1024_v39, %v534_v45  ;;  %v590_v52 = vadd.f32 %v1026_v40, %v536_v46  ;;  %v535_v53 = vmul.f32 %v1028_v41, %v402_v49  ;;  %v537_v54 = vmul.f32 %v1030_v42, %v475_v50 }
  0xe6   : > { %v404_v55 = vpop.f32.mrf.mxu0  ;;  %v477_v56 = vpop.f32.mrf.mxu1 }
  0xe7   : > { %830 = vtanh.f32 %v588_v51  ;;  %v589_v57 = vadd.f32 %v1034_v47, %v535_v53  ;;  %v591_v58 = vadd.f32 %v1036_v48, %v537_v54  ;;  %v538_v59 = vmul.f32 %v1020_v37, %v404_v55 }
  0xe8   : > { %832 = vtanh.f32 %v590_v52  ;;  %v540_v60 = vmul.f32 %v1022_v38, %v477_v56  ;;  %v406_v61 = vpop.f32.mrf.mxu0  ;;  %v479_v62 = vpop.f32.mrf.mxu1 }
  0xe9   : > { %834 = vtanh.f32 %v589_v57  ;;  %v592_v63 = vadd.f32 %v1024_v39, %v538_v59  ;;  %v539_v0 = vmul.f32 %v1028_v41, %v406_v61  ;;  %v541_v1 = vmul.f32 %v1030_v42, %v479_v62 }
  0xea   : > { %836 = vtanh.f32 %v591_v58  ;;  %v594_v2 = vadd.f32 %v1026_v40, %v540_v60  ;;  %v410_v3 = vpop.f32.mrf.mxu0  ;;  %v483_v4 = vpop.f32.mrf.mxu1 }
  0xeb   : > { %838 = vtanh.f32 %v592_v63  ;;  %v593_v5 = vadd.f32 %v1034_v47, %v539_v0  ;;  %v595_v6 = vadd.f32 %v1036_v48, %v541_v1  ;;  %v542_v7 = vmul.f32 %v1020_v37, %v410_v3 }
  0xec   : > { %840 = vtanh.f32 %v594_v2  ;;  %v544_v8 = vmul.f32 %v1022_v38, %v483_v4  ;;  %v412_v9 = vpop.f32.mrf.mxu0  ;;  %v485_v10 = vpop.f32.mrf.mxu1 }
  0xed   : > { %842 = vtanh.f32 %v593_v5  ;;  %v596_v11 = vadd.f32 %v1024_v39, %v542_v7  ;;  %v543_v12 = vmul.f32 %v1028_v41, %v412_v9  ;;  %v545_v13 = vmul.f32 %v1030_v42, %v485_v10 }
  0xee   : > { %844 = vtanh.f32 %v595_v6  ;;  %v598_v14 = vadd.f32 %v1026_v40, %v544_v8  ;;  %v414_v15 = vpop.f32.mrf.mxu0  ;;  %v487_v16 = vpop.f32.mrf.mxu1 }
  0xef   : > { %846 = vtanh.f32 %v596_v11  ;;  %v597_v17 = vadd.f32 %v1034_v47, %v543_v12  ;;  %v599_v18 = vadd.f32 %v1036_v48, %v545_v13  ;;  %v546_v19 = vmul.f32 %v1020_v37, %v414_v15 }
  0xf0   : > { %848 = vtanh.f32 %v598_v14  ;;  %v548_v20 = vmul.f32 %v1022_v38, %v487_v16  ;;  %v416_v21 = vpop.f32.mrf.mxu0  ;;  %v489_v22 = vpop.f32.mrf.mxu1 }
  0xf1   : > { %850 = vtanh.f32 %v597_v17  ;;  %v600_v23 = vadd.f32 %v1024_v39, %v546_v19  ;;  %v547_v24 = vmul.f32 %v1028_v41, %v416_v21  ;;  %v549_v25 = vmul.f32 %v1030_v42, %v489_v22 }
  0xf2   : > { %852 = vtanh.f32 %v599_v18  ;;  %v602_v26 = vadd.f32 %v1026_v40, %v548_v20  ;;  %v420_v27 = vpop.f32.mrf.mxu0  ;;  %v493_v28 = vpop.f32.mrf.mxu1 }
  0xf3   : > { %854 = vtanh.f32 %v600_v23  ;;  %v601_v29 = vadd.f32 %v1034_v47, %v547_v24  ;;  %v603_v30 = vadd.f32 %v1036_v48, %v549_v25  ;;  %v550_v31 = vmul.f32 %v1020_v37, %v420_v27 }
  0xf4   : > { %v831_v32 = vpop.eup %830  ;;  %856 = vtanh.f32 %v602_v26  ;;  %v552_v33 = vmul.f32 %v1022_v38, %v493_v28  ;;  %v422_v34 = vpop.f32.mrf.mxu0 }
  0xf5   : > { %v495_v35 = vpop.f32.mrf.mxu1  ;;  %v833_v36 = vpop.eup %832  ;;  %652 = vst [vmem:[%s1069_s14] sm:$0xff] %v831_v32  ;;  %858 = vtanh.f32 %v601_v29  ;;  %v604_v43 = vadd.f32 %v1024_v39, %v550_v31  ;;  %v551_v44 = vmul.f32 %v1028_v41, %v422_v34 }
  0xf6   : > { %v553_v45 = vmul.f32 %v1030_v42, %v495_v35  ;;  %v835_v46 = vpop.eup %834  ;;  %654 = vst [vmem:[%s1069_s14 + $0x10] sm:$0xff] %v833_v36  ;;  %860 = vtanh.f32 %v603_v30  ;;  %v606_v49 = vadd.f32 %v1026_v40, %v552_v33  ;;  %v424_v50 = vpop.f32.mrf.mxu0 }
  0xf7   : > { %v497_v51 = vpop.f32.mrf.mxu1  ;;  %v837_v52 = vpop.eup %836  ;;  %653 = vst [vmem:[%s1069_s14 + $0x8] sm:$0xff] %v835_v46  ;;  %862 = vtanh.f32 %v604_v43  ;;  %v605_v53 = vadd.f32 %v1034_v47, %v551_v44  ;;  %v554_v55 = vmul.f32 %v1020_v37, %v424_v50 }
  0xf8   : > { %v607_v54 = vadd.f32 %v1036_v48, %v553_v45  ;;  %v839_v56 = vpop.eup %838  ;;  %655 = vst [vmem:[%s1069_s14 + $0x18] sm:$0xff] %v837_v52  ;;  %864 = vtanh.f32 %v606_v49  ;;  %v556_v57 = vmul.f32 %v1022_v38, %v497_v51  ;;  %v426_v58 = vpop.f32.mrf.mxu0 }
  0xf9   : > { %v499_v59 = vpop.f32.mrf.mxu1  ;;  %v841_v60 = vpop.eup %840  ;;  %656 = vst [vmem:[%s1069_s14 + $0x20] sm:$0xff] %v839_v56  ;;  %866 = vtanh.f32 %v605_v53  ;;  %v608_v61 = vadd.f32 %v1024_v39, %v554_v55  ;;  %v555_v62 = vmul.f32 %v1028_v41, %v426_v58 }
  0xfa   : > { %v557_v63 = vmul.f32 %v1030_v42, %v499_v59  ;;  %v843_v0 = vpop.eup %842  ;;  %658 = vst [vmem:[%s1069_s14 + $0x30] sm:$0xff] %v841_v60  ;;  %868 = vtanh.f32 %v607_v54  ;;  %v610_v1 = vadd.f32 %v1026_v40, %v556_v57  ;;  %v430_v2 = vpop.f32.mrf.mxu0 }
  0xfb   : > { %v503_v3 = vpop.f32.mrf.mxu1  ;;  %v845_v4 = vpop.eup %844  ;;  %657 = vst [vmem:[%s1069_s14 + $0x28] sm:$0xff] %v843_v0  ;;  %870 = vtanh.f32 %v608_v61  ;;  %v609_v5 = vadd.f32 %v1034_v47, %v555_v62  ;;  %v558_v7 = vmul.f32 %v1020_v37, %v430_v2 }
  0xfc   : > { %v611_v6 = vadd.f32 %v1036_v48, %v557_v63  ;;  %v847_v8 = vpop.eup %846  ;;  %659 = vst [vmem:[%s1069_s14 + $0x38] sm:$0xff] %v845_v4  ;;  %872 = vtanh.f32 %v610_v1  ;;  %v560_v9 = vmul.f32 %v1022_v38, %v503_v3  ;;  %v432_v10 = vpop.f32.mrf.mxu0 }
  0xfd   : > { %v505_v11 = vpop.f32.mrf.mxu1  ;;  %v849_v12 = vpop.eup %848  ;;  %660 = vst [vmem:[%s1069_s14 + $0x40] sm:$0xff] %v847_v8  ;;  %874 = vtanh.f32 %v609_v5  ;;  %v612_v13 = vadd.f32 %v1024_v39, %v558_v7  ;;  %v559_v14 = vmul.f32 %v1028_v41, %v432_v10 }
  0xfe   : > { %v561_v15 = vmul.f32 %v1030_v42, %v505_v11  ;;  %v851_v16 = vpop.eup %850  ;;  %662 = vst [vmem:[%s1069_s14 + $0x50] sm:$0xff] %v849_v12  ;;  %876 = vtanh.f32 %v611_v6  ;;  %v614_v17 = vadd.f32 %v1026_v40, %v560_v9  ;;  %v434_v18 = vpop.f32.mrf.mxu0 }
  0xff   : > { %v507_v19 = vpop.f32.mrf.mxu1  ;;  %v853_v20 = vpop.eup %852  ;;  %661 = vst [vmem:[%s1069_s14 + $0x48] sm:$0xff] %v851_v16  ;;  %878 = vtanh.f32 %v612_v13  ;;  %v613_v21 = vadd.f32 %v1034_v47, %v559_v14  ;;  %v562_v23 = vmul.f32 %v1020_v37, %v434_v18 }
 0x100   : > { %v615_v22 = vadd.f32 %v1036_v48, %v561_v15  ;;  %v855_v24 = vpop.eup %854  ;;  %663 = vst [vmem:[%s1069_s14 + $0x58] sm:$0xff] %v853_v20  ;;  %880 = vtanh.f32 %v614_v17  ;;  %v564_v25 = vmul.f32 %v1022_v38, %v507_v19  ;;  %v436_v26 = vpop.f32.mrf.mxu0 }
 0x101   : > { %v509_v27 = vpop.f32.mrf.mxu1  ;;  %v857_v28 = vpop.eup %856  ;;  %664 = vst [vmem:[%s1069_s14 + $0x60] sm:$0xff] %v855_v24  ;;  %882 = vtanh.f32 %v613_v21  ;;  %v616_v29 = vadd.f32 %v1024_v39, %v562_v23  ;;  %v563_v30 = vmul.f32 %v1028_v41, %v436_v26 }
 0x102   : > { %v565_v31 = vmul.f32 %v1030_v42, %v509_v27  ;;  %v859_v37 = vpop.eup %858  ;;  %666 = vst [vmem:[%s1069_s14 + $0x70] sm:$0xff] %v857_v28  ;;  %884 = vtanh.f32 %v615_v22  ;;  %v618_v32 = vadd.f32 %v1026_v40, %v564_v25 }
 0x103   : > { %v861_v38 = vpop.eup %860  ;;  %665 = vst [vmem:[%s1069_s14 + $0x68] sm:$0xff] %v859_v37  ;;  %886 = vtanh.f32 %v616_v29  ;;  %v617_v33 = vadd.f32 %v1034_v47, %v563_v30 }
 0x104   : > { %v619_v39 = vadd.f32 %v1036_v48, %v565_v31  ;;  %v863_v34 = vpop.eup %862  ;;  %667 = vst [vmem:[%s1069_s14 + $0x78] sm:$0xff] %v861_v38  ;;  %888 = vtanh.f32 %v618_v32 }
 0x105   : > { %v865_v41 = vpop.eup %864  ;;  %668 = vst [vmem:[%s1069_s14 + $0x80] sm:$0xff] %v863_v34  ;;  %890 = vtanh.f32 %v617_v33 }
 0x106   : > { %v867_v40 = vpop.eup %866  ;;  %670 = vst [vmem:[%s1069_s14 + $0x90] sm:$0xff] %v865_v41  ;;  %892 = vtanh.f32 %v619_v39 }
 0x107   : > { %v869_v42 = vpop.eup %868  ;;  %669 = vst [vmem:[%s1069_s14 + $0x88] sm:$0xff] %v867_v40 }
 0x108   : > { %v871_v47 = vpop.eup %870  ;;  %671 = vst [vmem:[%s1069_s14 + $0x98] sm:$0xff] %v869_v42 }
 0x109   : > { %v873_v48 = vpop.eup %872  ;;  %672 = vst [vmem:[%s1069_s14 + $0xa0] sm:$0xff] %v871_v47 }
 0x10a   : > { %v875_v35 = vpop.eup %874  ;;  %674 = vst [vmem:[%s1069_s14 + $0xb0] sm:$0xff] %v873_v48 }
 0x10b   : > { %v877_v36 = vpop.eup %876  ;;  %673 = vst [vmem:[%s1069_s14 + $0xa8] sm:$0xff] %v875_v35 }
 0x10c   : > { %v879_v43 = vpop.eup %878  ;;  %675 = vst [vmem:[%s1069_s14 + $0xb8] sm:$0xff] %v877_v36 }
 0x10d   : > { %v881_v44 = vpop.eup %880  ;;  %676 = vst [vmem:[%s1069_s14 + $0xc0] sm:$0xff] %v879_v43 }
 0x10e   : > { %v883_v45 = vpop.eup %882  ;;  %678 = vst [vmem:[%s1069_s14 + $0xd0] sm:$0xff] %v881_v44 }
 0x10f   : > { %v885_v46 = vpop.eup %884  ;;  %677 = vst [vmem:[%s1069_s14 + $0xc8] sm:$0xff] %v883_v45 }
 0x110   : > { %v887_v49 = vpop.eup %886  ;;  %679 = vst [vmem:[%s1069_s14 + $0xd8] sm:$0xff] %v885_v46 }
 0x111   : > { %v889_v50 = vpop.eup %888  ;;  %680 = vst [vmem:[%s1069_s14 + $0xe0] sm:$0xff] %v887_v49 }
 0x112   : > { %v891_v51 = vpop.eup %890  ;;  %682 = vst [vmem:[%s1069_s14 + $0xf0] sm:$0xff] %v889_v50 }
 0x113   : > { %v893_v52 = vpop.eup %892  ;;  %681 = vst [vmem:[%s1069_s14 + $0xe8] sm:$0xff] %v891_v51 }
 0x114   : > { %683 = vst [vmem:[%s1069_s14 + $0xf8] sm:$0xff] %v893_v52 }
 0x115 PF: > { %s14_s15 = sadd.s32 1, %s900_s15  }
 0x116   : > { %p11_p4 = scmp.ge.s32.totalorder %s14_s15, 4  }
 0x118   :  { %13 = sbr.rel (!%p11_p4) target bundleno = 1 (0x1), region = 66 }

</bundles_post_ra>
